<compile_context>
chip_gen: v7x
topology: tpu7x:2x2x1
jax: 0.10.0
libtpu: 0.0.40
codegen_flags: <defaults>
</compile_context>

<pallas_src>
import functools

import jax
import jax.numpy as jnp
from jax import lax
from jax.experimental import pallas as pl
from jax.experimental.pallas import tpu as pltpu


DEFAULT_VMEM_LIMIT = 32 * 1024 * 1024  # safe scoped-VMEM limit on v5e/v6e/v7x


# ----------------------------------------------------------------------------
# Fused kernel: BN+ReLU (main/aux) -> in-VMEM 3x3 catconv (one wide-K matmul)
# -> BN+ReLU -> fused 1x1 projections -> softmax attention -> fused output
# projections + residual adds.  Grid = (B,); layout is (channels, tokens).
# ----------------------------------------------------------------------------
def _nonlocal_kernel(main_ref, aux_ref, bn_scale_ref, bn_shift_ref,
                     wcat_ref, wbig_ref, bbig_ref, wout_ref, bout_ref,
                     z_ref, p_ref, *, H, W, C, Ci):
    f32 = jnp.float32
    bf16 = jnp.bfloat16
    N = H * W

    mf = main_ref[0]                      # (C, N) f32, tokens on lanes
    af = aux_ref[0]                       # (C, N) f32

    # Folded (inference) BatchNorm + ReLU; (C,1) params broadcast over lanes.
    ms = bn_scale_ref[0:C]
    as_ = bn_scale_ref[C:2 * C]
    cs = bn_scale_ref[2 * C:3 * C]
    mb = bn_shift_ref[0:C]
    ab = bn_shift_ref[C:2 * C]
    cb = bn_shift_ref[2 * C:3 * C]

    mnl = jnp.maximum(mf * ms + mb, 0.0)                     # (C, N)
    anl = jnp.maximum(af * as_ + ab, 0.0)                    # (C, N)
    cat = jnp.concatenate([mnl, anl], axis=0)                # (2C, N)

    # Token-index validity masks for the 3x3 "same" conv (built in-kernel).
    n_idx = lax.broadcasted_iota(jnp.int32, (1, N), 1)
    col = n_idx % W
    valid_up = n_idx >= W             # row h-1 exists
    valid_dn = n_idx < (N - W)        # row h+1 exists
    valid_lf = col >= 1               # col w-1 exists
    valid_rt = col <= (W - 2)         # col w+1 exists

    # im2col: 9 lane-rolled (XLU) copies of cat stacked along sublanes,
    # then ONE (C, 9*2C) @ (9*2C, N) MXU matmul (single bf16 cast of the slab).
    pieces = []
    for oh in (-1, 0, 1):
        for ow in (-1, 0, 1):
            s = oh * W + ow
            shifted = cat if s == 0 else pltpu.roll(cat, shift=(-s) % N, axis=1)
            mask = None
            if oh == -1:
                mask = valid_up
            elif oh == 1:
                mask = valid_dn
            if ow == -1:
                mask = valid_lf if mask is None else jnp.logical_and(mask, valid_lf)
            elif ow == 1:
                mask = valid_rt if mask is None else jnp.logical_and(mask, valid_rt)
            if mask is not None:
                shifted = jnp.where(mask, shifted, jnp.zeros_like(shifted))
            pieces.append(shifted)
    slab_b = jnp.concatenate(pieces, axis=0).astype(bf16)    # (9*2C, N)

    conv = jnp.dot(wcat_ref[...], slab_b,
                   preferred_element_type=f32)               # (C, N)
    catf = jnp.maximum(conv * cs + cb, 0.0)                  # catconv BN+ReLU

    # Fused 1x1 projections: [theta; phi; g; l] = W_big @ [catf; mnl; anl].
    x_all = jnp.concatenate([catf, mnl, anl], axis=0).astype(bf16)   # (3C, N)
    proj = jnp.dot(wbig_ref[...], x_all,
                   preferred_element_type=f32) + bbig_ref[...]       # (4Ci, N)

    qk = proj[0:2 * Ci]                                      # [theta; phi]
    gl_b = proj[2 * Ci:4 * Ci].astype(bf16)                  # [g; l] (2Ci, N)

    # One small (2Ci, N) -> (N, 2Ci) transpose puts theta/phi in the MXU-native
    # orientation for the (N, N) score matmul (NT form, no lhs transpose).
    qkT = qk.T                                               # (N, 2Ci)
    th_b = qkT[:, 0:Ci].astype(bf16)
    ph_b = qkT[:, Ci:2 * Ci].astype(bf16)

    scores = lax.dot_general(th_b, ph_b, (((1,), (1,)), ((), ())),
                             preferred_element_type=f32)     # (Nq, Nkv)
    m = jnp.max(scores, axis=-1, keepdims=True)
    p = jnp.exp(scores - m)
    denom = jnp.sum(p, axis=-1, keepdims=True)
    attn_b = (p * pl.reciprocal(denom, approx=True)).astype(bf16)

    # Fused PV: [y; m] = [g; l] @ attn^T  -> (2Ci, Nq), lane-dense output.
    ym = lax.dot_general(gl_b, attn_b, (((1,), (1,)), ((), ())),
                         preferred_element_type=f32)

    # Fused output projections (block-diagonal weight) + both residual adds.
    res = jnp.concatenate([mf, af], axis=0)                  # (2C, N)
    zp = (jnp.dot(wout_ref[...], ym.astype(bf16),
                  preferred_element_type=f32)
          + bout_ref[...] + res)                             # (2C, N)

    z_ref[0] = zp[0:C].astype(z_ref.dtype)
    p_ref[0] = zp[C:2 * C].astype(p_ref.dtype)


# ----------------------------------------------------------------------------
# Host-side weight packing (folded into the jit; tiny).
# ----------------------------------------------------------------------------
def _prep_weights(params, C, Ci):
    f32, bf16 = jnp.float32, jnp.bfloat16
    bn_scale = jnp.concatenate(
        [params["main_scale"], params["aux_scale"], params["cat_scale"]]
    ).reshape(3 * C, 1).astype(f32)
    bn_shift = jnp.concatenate(
        [params["main_shift"], params["aux_shift"], params["cat_shift"]]
    ).reshape(3 * C, 1).astype(f32)

    # (C, 9*2C): wcatT[cout, t*2C + cin] = w_cat[t, cin, cout]
    wcatT = jnp.transpose(params["w_cat"], (2, 0, 1)).reshape(
        C, 9 * 2 * C).astype(bf16)

    zci = jnp.zeros((Ci, C), f32)
    wbig = jnp.concatenate([
        jnp.concatenate([params["w_th"].T, zci, zci], axis=1),   # theta <- catf
        jnp.concatenate([params["w_ph"].T, zci, zci], axis=1),   # phi   <- catf
        jnp.concatenate([zci, params["w_rg"].T, zci], axis=1),   # g     <- mnl
        jnp.concatenate([zci, zci, params["w_fg"].T], axis=1),   # l     <- anl
    ], axis=0).astype(bf16)                                      # (4Ci, 3C)
    bbig = jnp.concatenate(
        [params["b_th"], params["b_ph"], params["b_rg"], params["b_fg"]]
    ).reshape(4 * Ci, 1).astype(f32)

    zc = jnp.zeros((C, Ci), f32)
    wout = jnp.concatenate([
        jnp.concatenate([params["w_rw"].T, zc], axis=1),         # z <- y
        jnp.concatenate([zc, params["w_fw"].T], axis=1),         # p <- m
    ], axis=0).astype(bf16)                                      # (2C, 2Ci)
    bout = jnp.concatenate(
        [params["b_rw"], params["b_fw"]]).reshape(2 * C, 1).astype(f32)
    return bn_scale, bn_shift, wcatT, wbig, bbig, wout, bout


# ----------------------------------------------------------------------------
# Full forward: NCHW in, NCHW out (matches the PyTorch module layout).
# ----------------------------------------------------------------------------
@jax.jit
def nonlocal_block_forward(main_fea, aux_fea, params):
    B, C, H, W = main_fea.shape
    Ci = params["w_rg"].shape[1]
    N = H * W
    assert N % 128 == 0 and C % 8 == 0, "kernel assumes lane/sublane-aligned dims"

    main_flat = main_fea.reshape(B, C, N).astype(jnp.float32)
    aux_flat = aux_fea.reshape(B, C, N).astype(jnp.float32)
    bn_scale, bn_shift, wcatT, wbig, bbig, wout, bout = _prep_weights(params, C, Ci)

    kern = functools.partial(_nonlocal_kernel, H=H, W=W, C=C, Ci=Ci)

    def full2d(shape):
        return pl.BlockSpec(shape, lambda b: (0, 0))

    tok = pl.BlockSpec((1, C, N), lambda b: (b, 0, 0))

    z, p = pl.pallas_call(
        kern,
        out_shape=(jax.ShapeDtypeStruct((B, C, N), jnp.float32),
                   jax.ShapeDtypeStruct((B, C, N), jnp.float32)),
        grid=(B,),
        in_specs=[tok, tok,
                  full2d((3 * C, 1)), full2d((3 * C, 1)),
                  full2d((C, 18 * C)),
                  full2d((4 * Ci, 3 * C)), full2d((4 * Ci, 1)),
                  full2d((2 * C, 2 * Ci)), full2d((2 * C, 1))],
        out_specs=(pl.BlockSpec((1, C, N), lambda b: (b, 0, 0)),
                   pl.BlockSpec((1, C, N), lambda b: (b, 0, 0))),
        compiler_params=pltpu.CompilerParams(
            dimension_semantics=("parallel",),
            vmem_limit_bytes=DEFAULT_VMEM_LIMIT),
        # Residuals alias the outputs (same shape/dtype); z/p are written only
        # at the end of each grid step and use the same (b,...) block index as
        # main/aux, so the aliased blocks are never clobbered before their read.
        input_output_aliases={0: 0, 1: 1},
    )(main_flat, aux_flat, bn_scale, bn_shift, wcatT, wbig, bbig, wout, bout)

    return z.reshape(B, C, H, W), p.reshape(B, C, H, W)


# ----------------------------------------------------------------------------
# Pure-JAX reference (f32, HIGHEST precision) for verification.  NCHW in/out.
# ----------------------------------------------------------------------------
def reference_forward(main_fea, aux_fea, p):
    B, C, H, W = main_fea.shape
    N = H * W
    hp = lax.Precision.HIGHEST
    mf = main_fea.reshape(B, C, N).transpose(0, 2, 1)   # (B, N, C)
    af = aux_fea.reshape(B, C, N).transpose(0, 2, 1)
    mnl = jnp.maximum(mf * p["main_scale"] + p["main_shift"], 0.0)
    anl = jnp.maximum(af * p["aux_scale"] + p["aux_shift"], 0.0)
    cat = jnp.concatenate(
        [mnl.reshape(B, H, W, C), anl.reshape(B, H, W, C)], axis=-1)
    catp = jnp.pad(cat, ((0, 0), (1, 1), (1, 1), (0, 0)))
    acc = jnp.zeros((B, H, W, C), jnp.float32)
    t = 0
    for kh in range(3):
        for kw in range(3):
            patch = catp[:, kh:kh + H, kw:kw + W, :]
            acc = acc + jnp.einsum("bhwf,fc->bhwc", patch, p["w_cat"][t],
                                   precision=hp)
            t += 1
    catf = jnp.maximum(
        acc.reshape(B, N, C) * p["cat_scale"] + p["cat_shift"], 0.0)
    g = jnp.einsum("bnc,ci->bni", mnl, p["w_rg"], precision=hp) + p["b_rg"]
    l = jnp.einsum("bnc,ci->bni", anl, p["w_fg"], precision=hp) + p["b_fg"]
    th = jnp.einsum("bnc,ci->bni", catf, p["w_th"], precision=hp) + p["b_th"]
    ph = jnp.einsum("bnc,ci->bni", catf, p["w_ph"], precision=hp) + p["b_ph"]
    f = jnp.einsum("bni,bmi->bnm", th, ph, precision=hp)
    attn = jax.nn.softmax(f, axis=-1)
    y = jnp.einsum("bnm,bmi->bni", attn, g, precision=hp)
    m = jnp.einsum("bnm,bmi->bni", attn, l, precision=hp)
    z = jnp.einsum("bni,ic->bnc", y, p["w_rw"], precision=hp) + p["b_rw"] + mf
    pp = jnp.einsum("bni,ic->bnc", m, p["w_fw"], precision=hp) + p["b_fw"] + af
    z = z.transpose(0, 2, 1).reshape(B, C, H, W)
    pp = pp.transpose(0, 2, 1).reshape(B, C, H, W)
    return z, pp


# ----------------------------------------------------------------------------
# Deterministic parameter construction (synthetic; matches module shapes).
# ----------------------------------------------------------------------------
def make_params(key, C, Ci):
    ks = jax.random.split(key, 16)
    eps = 1e-5

    def bn_fold(k):
        k1, k2, k3, k4 = jax.random.split(k, 4)
        gamma = 1.0 + 0.1 * jax.random.normal(k1, (C,), jnp.float32)
        beta = 0.1 * jax.random.normal(k2, (C,), jnp.float32)
        mean = 0.1 * jax.random.normal(k3, (C,), jnp.float32)
        var = 1.0 + 0.1 * jnp.abs(jax.random.normal(k4, (C,), jnp.float32))
        scale = gamma / jnp.sqrt(var + eps)
        shift = beta - mean * scale
        return scale, shift

    main_scale, main_shift = bn_fold(ks[0])
    aux_scale, aux_shift = bn_fold(ks[1])
    cat_scale, cat_shift = bn_fold(ks[2])

    def w(k, shape, s=0.1):
        return s * jax.random.normal(k, shape, jnp.float32)

    return dict(
        main_scale=main_scale, main_shift=main_shift,
        aux_scale=aux_scale, aux_shift=aux_shift,
        cat_scale=cat_scale, cat_shift=cat_shift,
        # catconv: Conv2d(2C -> C, 3x3, padding=1, bias=False): (9, 2C, C),
        # tap index t = kh*3 + kw.
        w_cat=w(ks[3], (9, 2 * C, C)),
        # 1x1 convs stored as (Cin, Cout)
        w_rg=w(ks[4], (C, Ci)), b_rg=w(ks[5], (Ci,)),
        w_fg=w(ks[6], (C, Ci)), b_fg=w(ks[7], (Ci,)),
        w_th=w(ks[8], (C, Ci)), b_th=w(ks[9], (Ci,)),
        w_ph=w(ks[10], (C, Ci)), b_ph=w(ks[11], (Ci,)),
        w_rw=w(ks[12], (Ci, C)), b_rw=w(ks[13], (C,)),
        w_fw=w(ks[14], (Ci, C)), b_fw=w(ks[15], (C,)),
    )


if __name__ == "__main__":
    B, C, H, W = 2, 8, 16, 16           # in_channels=8 -> inter_channels=4
    Ci = C // 2                          # N = H*W = 256 tokens

    key = jax.random.PRNGKey(0)
    k_main, k_aux, k_par = jax.random.split(key, 3)
    main_fea = jax.random.normal(k_main, (B, C, H, W), jnp.float32)
    aux_fea = jax.random.normal(k_aux, (B, C, H, W), jnp.float32)
    params = make_params(k_par, C, Ci)

    z, p = nonlocal_block_forward(main_fea, aux_fea, params)
    jax.block_until_ready((z, p))

    z_ref, p_ref = reference_forward(main_fea, aux_fea, params)
    assert z.shape == (B, C, H, W) and p.shape == (B, C, H, W)
    # Kernel uses bf16 MXU operands with f32 accumulation; reference is f32
    # HIGHEST, hence the slightly wider tolerance.
    assert jnp.allclose(z, z_ref, atol=5e-2, rtol=5e-2)
    assert jnp.allclose(p, p_ref, atol=5e-2, rtol=5e-2)

    print("KERNEL_OK")
</pallas_src>

<mosaic_0001>
module attributes {stable_mosaic.version = 11 : i64} {
  func.func @_nonlocal_kernel(%arg0: i32, %arg1: memref<1x8x256xf32, #tpu.memory_space<vmem>>, %arg2: memref<1x8x256xf32, #tpu.memory_space<vmem>>, %arg3: memref<24x1xf32, #tpu.memory_space<vmem>>, %arg4: memref<24x1xf32, #tpu.memory_space<vmem>>, %arg5: memref<8x144xbf16, #tpu.memory_space<vmem>>, %arg6: memref<16x24xbf16, #tpu.memory_space<vmem>>, %arg7: memref<16x1xf32, #tpu.memory_space<vmem>>, %arg8: memref<16x8xbf16, #tpu.memory_space<vmem>>, %arg9: memref<16x1xf32, #tpu.memory_space<vmem>>, %arg10: memref<1x8x256xf32, #tpu.memory_space<vmem>>, %arg11: memref<1x8x256xf32, #tpu.memory_space<vmem>>) attributes {dimension_semantics = [#tpu.dimension_semantics<parallel>], iteration_bounds = array<i64: 2>, scalar_prefetch = 0 : i64, scratch_operands = 0 : i64, tpu.core_type = #tpu.core_type<tc>, window_params = [{transform_indices = @transform_0, window_bounds = array<i64: 1, 8, 256>}, {transform_indices = @transform_1, window_bounds = array<i64: 1, 8, 256>}, {pipeline_mode = #tpu.pipeline_mode<synchronous>, transform_indices = @transform_2, window_bounds = array<i64: 24, 1>}, {pipeline_mode = #tpu.pipeline_mode<synchronous>, transform_indices = @transform_3, window_bounds = array<i64: 24, 1>}, {pipeline_mode = #tpu.pipeline_mode<synchronous>, transform_indices = @transform_4, window_bounds = array<i64: 8, 144>}, {pipeline_mode = #tpu.pipeline_mode<synchronous>, transform_indices = @transform_5, window_bounds = array<i64: 16, 24>}, {pipeline_mode = #tpu.pipeline_mode<synchronous>, transform_indices = @transform_6, window_bounds = array<i64: 16, 1>}, {pipeline_mode = #tpu.pipeline_mode<synchronous>, transform_indices = @transform_7, window_bounds = array<i64: 16, 8>}, {pipeline_mode = #tpu.pipeline_mode<synchronous>, transform_indices = @transform_8, window_bounds = array<i64: 16, 1>}, {transform_indices = @transform_9, window_bounds = array<i64: 1, 8, 256>}, {transform_indices = @transform_10, window_bounds = array<i64: 1, 8, 256>}]} {
    %c0 = arith.constant 0 : index
    %c0_0 = arith.constant 0 : index
    %c0_1 = arith.constant 0 : index
    %0 = vector.load %arg1[%c0, %c0_0, %c0_1] : memref<1x8x256xf32, #tpu.memory_space<vmem>>, vector<1x8x256xf32>
    %1 = vector.shape_cast %0 : vector<1x8x256xf32> to vector<8x256xf32>
    %c0_2 = arith.constant 0 : index
    %c0_3 = arith.constant 0 : index
    %c0_4 = arith.constant 0 : index
    %2 = vector.load %arg2[%c0_2, %c0_3, %c0_4] : memref<1x8x256xf32, #tpu.memory_space<vmem>>, vector<1x8x256xf32>
    %3 = vector.shape_cast %2 : vector<1x8x256xf32> to vector<8x256xf32>
    %c0_5 = arith.constant 0 : index
    %c0_6 = arith.constant 0 : index
    %4 = vector.load %arg3[%c0_5, %c0_6] : memref<24x1xf32, #tpu.memory_space<vmem>>, vector<8x1xf32>
    %c8 = arith.constant 8 : index
    %c0_7 = arith.constant 0 : index
    %5 = vector.load %arg3[%c8, %c0_7] : memref<24x1xf32, #tpu.memory_space<vmem>>, vector<8x1xf32>
    %c16 = arith.constant 16 : index
    %c0_8 = arith.constant 0 : index
    %6 = vector.load %arg3[%c16, %c0_8] : memref<24x1xf32, #tpu.memory_space<vmem>>, vector<8x1xf32>
    %c0_9 = arith.constant 0 : index
    %c0_10 = arith.constant 0 : index
    %7 = vector.load %arg4[%c0_9, %c0_10] : memref<24x1xf32, #tpu.memory_space<vmem>>, vector<8x1xf32>
    %c8_11 = arith.constant 8 : index
    %c0_12 = arith.constant 0 : index
    %8 = vector.load %arg4[%c8_11, %c0_12] : memref<24x1xf32, #tpu.memory_space<vmem>>, vector<8x1xf32>
    %c16_13 = arith.constant 16 : index
    %c0_14 = arith.constant 0 : index
    %9 = vector.load %arg4[%c16_13, %c0_14] : memref<24x1xf32, #tpu.memory_space<vmem>>, vector<8x1xf32>
    %10 = vector.broadcast %4 : vector<8x1xf32> to vector<8x256xf32>
    %11 = arith.mulf %1, %10 : vector<8x256xf32>
    %12 = vector.broadcast %7 : vector<8x1xf32> to vector<8x256xf32>
    %13 = arith.addf %11, %12 : vector<8x256xf32>
    %cst = arith.constant 0.000000e+00 : f32
    %14 = vector.broadcast %cst : f32 to vector<8x256xf32>
    %15 = arith.maximumf %13, %14 : vector<8x256xf32>
    %16 = vector.broadcast %5 : vector<8x1xf32> to vector<8x256xf32>
    %17 = arith.mulf %3, %16 : vector<8x256xf32>
    %18 = vector.broadcast %8 : vector<8x1xf32> to vector<8x256xf32>
    %19 = arith.addf %17, %18 : vector<8x256xf32>
    %cst_15 = arith.constant 0.000000e+00 : f32
    %20 = vector.broadcast %cst_15 : f32 to vector<8x256xf32>
    %21 = arith.maximumf %19, %20 : vector<8x256xf32>
    %22 = tpu.concatenate %15, %21 in 0 : vector<8x256xf32>, vector<8x256xf32> -> vector<16x256xf32>
    %23 = tpu.iota {dimensions = array<i32: 1>} : vector<1x256xi32>
    %c16_i32 = arith.constant 16 : i32
    %c0_i32 = arith.constant 0 : i32
    %24 = arith.cmpi eq, %c16_i32, %c0_i32 : i32
    %c1_i32 = arith.constant 1 : i32
    %25 = arith.select %24, %c1_i32, %c16_i32 : i32
    %26 = vector.broadcast %25 : i32 to vector<1x256xi32>
    %27 = arith.remsi %23, %26 : vector<1x256xi32>
    %c0_i32_16 = arith.constant 0 : i32
    %28 = vector.broadcast %c0_i32_16 : i32 to vector<1x256xi32>
    %29 = arith.cmpi ne, %27, %28 : vector<1x256xi32>
    %c0_i32_17 = arith.constant 0 : i32
    %30 = vector.broadcast %c0_i32_17 : i32 to vector<1x256xi32>
    %31 = arith.cmpi slt, %27, %30 : vector<1x256xi32>
    %c0_i32_18 = arith.constant 0 : i32
    %32 = arith.cmpi slt, %25, %c0_i32_18 : i32
    %33 = vector.broadcast %32 : i1 to vector<1x256xi1>
    %34 = vector.broadcast %33 : vector<1x256xi1> to vector<1x256xi1>
    %35 = arith.xori %31, %34 : vector<1x256xi1>
    %36 = arith.andi %35, %29 : vector<1x256xi1>
    %37 = vector.broadcast %25 : i32 to vector<1x256xi32>
    %38 = arith.addi %27, %37 : vector<1x256xi32>
    %39 = arith.select %36, %38, %27 : vector<1x256xi1>, vector<1x256xi32>
    %c16_i32_19 = arith.constant 16 : i32
    %40 = vector.broadcast %c16_i32_19 : i32 to vector<1x256xi32>
    %41 = arith.cmpi sge, %23, %40 : vector<1x256xi32>
    %c240_i32 = arith.constant 240 : i32
    %42 = vector.broadcast %c240_i32 : i32 to vector<1x256xi32>
    %43 = arith.cmpi slt, %23, %42 : vector<1x256xi32>
    %c1_i32_20 = arith.constant 1 : i32
    %44 = vector.broadcast %c1_i32_20 : i32 to vector<1x256xi32>
    %45 = arith.cmpi sge, %39, %44 : vector<1x256xi32>
    %c14_i32 = arith.constant 14 : i32
    %46 = vector.broadcast %c14_i32 : i32 to vector<1x256xi32>
    %47 = arith.cmpi sle, %39, %46 : vector<1x256xi32>
    %c17_i32 = arith.constant 17 : i32
    %48 = tpu.dynamic_rotate %22 by %c17_i32 dim 1 : vector<16x256xf32>, i32 -> vector<16x256xf32>
    %49 = arith.andi %41, %45 : vector<1x256xi1>
    %cst_21 = arith.constant 0.000000e+00 : f32
    %50 = vector.broadcast %cst_21 : f32 to vector<16x256xf32>
    %51 = vector.shape_cast %49 : vector<1x256xi1> to vector<1x256xi1>
    %52 = vector.broadcast %51 : vector<1x256xi1> to vector<16x256xi1>
    %53 = arith.select %52, %48, %50 : vector<16x256xi1>, vector<16x256xf32>
    %c16_i32_22 = arith.constant 16 : i32
    %54 = tpu.dynamic_rotate %22 by %c16_i32_22 dim 1 : vector<16x256xf32>, i32 -> vector<16x256xf32>
    %cst_23 = arith.constant 0.000000e+00 : f32
    %55 = vector.broadcast %cst_23 : f32 to vector<16x256xf32>
    %56 = vector.shape_cast %41 : vector<1x256xi1> to vector<1x256xi1>
    %57 = vector.broadcast %56 : vector<1x256xi1> to vector<16x256xi1>
    %58 = arith.select %57, %54, %55 : vector<16x256xi1>, vector<16x256xf32>
    %c15_i32 = arith.constant 15 : i32
    %59 = tpu.dynamic_rotate %22 by %c15_i32 dim 1 : vector<16x256xf32>, i32 -> vector<16x256xf32>
    %60 = arith.andi %41, %47 : vector<1x256xi1>
    %cst_24 = arith.constant 0.000000e+00 : f32
    %61 = vector.broadcast %cst_24 : f32 to vector<16x256xf32>
    %62 = vector.shape_cast %60 : vector<1x256xi1> to vector<1x256xi1>
    %63 = vector.broadcast %62 : vector<1x256xi1> to vector<16x256xi1>
    %64 = arith.select %63, %59, %61 : vector<16x256xi1>, vector<16x256xf32>
    %c1_i32_25 = arith.constant 1 : i32
    %65 = tpu.dynamic_rotate %22 by %c1_i32_25 dim 1 : vector<16x256xf32>, i32 -> vector<16x256xf32>
    %cst_26 = arith.constant 0.000000e+00 : f32
    %66 = vector.broadcast %cst_26 : f32 to vector<16x256xf32>
    %67 = vector.shape_cast %45 : vector<1x256xi1> to vector<1x256xi1>
    %68 = vector.broadcast %67 : vector<1x256xi1> to vector<16x256xi1>
    %69 = arith.select %68, %65, %66 : vector<16x256xi1>, vector<16x256xf32>
    %c255_i32 = arith.constant 255 : i32
    %70 = tpu.dynamic_rotate %22 by %c255_i32 dim 1 : vector<16x256xf32>, i32 -> vector<16x256xf32>
    %cst_27 = arith.constant 0.000000e+00 : f32
    %71 = vector.broadcast %cst_27 : f32 to vector<16x256xf32>
    %72 = vector.shape_cast %47 : vector<1x256xi1> to vector<1x256xi1>
    %73 = vector.broadcast %72 : vector<1x256xi1> to vector<16x256xi1>
    %74 = arith.select %73, %70, %71 : vector<16x256xi1>, vector<16x256xf32>
    %c241_i32 = arith.constant 241 : i32
    %75 = tpu.dynamic_rotate %22 by %c241_i32 dim 1 : vector<16x256xf32>, i32 -> vector<16x256xf32>
    %76 = arith.andi %43, %45 : vector<1x256xi1>
    %cst_28 = arith.constant 0.000000e+00 : f32
    %77 = vector.broadcast %cst_28 : f32 to vector<16x256xf32>
    %78 = vector.shape_cast %76 : vector<1x256xi1> to vector<1x256xi1>
    %79 = vector.broadcast %78 : vector<1x256xi1> to vector<16x256xi1>
    %80 = arith.select %79, %75, %77 : vector<16x256xi1>, vector<16x256xf32>
    %c240_i32_29 = arith.constant 240 : i32
    %81 = tpu.dynamic_rotate %22 by %c240_i32_29 dim 1 : vector<16x256xf32>, i32 -> vector<16x256xf32>
    %cst_30 = arith.constant 0.000000e+00 : f32
    %82 = vector.broadcast %cst_30 : f32 to vector<16x256xf32>
    %83 = vector.shape_cast %43 : vector<1x256xi1> to vector<1x256xi1>
    %84 = vector.broadcast %83 : vector<1x256xi1> to vector<16x256xi1>
    %85 = arith.select %84, %81, %82 : vector<16x256xi1>, vector<16x256xf32>
    %c239_i32 = arith.constant 239 : i32
    %86 = tpu.dynamic_rotate %22 by %c239_i32 dim 1 : vector<16x256xf32>, i32 -> vector<16x256xf32>
    %87 = arith.andi %43, %47 : vector<1x256xi1>
    %cst_31 = arith.constant 0.000000e+00 : f32
    %88 = vector.broadcast %cst_31 : f32 to vector<16x256xf32>
    %89 = vector.shape_cast %87 : vector<1x256xi1> to vector<1x256xi1>
    %90 = vector.broadcast %89 : vector<1x256xi1> to vector<16x256xi1>
    %91 = arith.select %90, %86, %88 : vector<16x256xi1>, vector<16x256xf32>
    %92 = tpu.concatenate %53, %58, %64, %69, %22, %74, %80, %85, %91 in 0 : vector<16x256xf32>, vector<16x256xf32>, vector<16x256xf32>, vector<16x256xf32>, vector<16x256xf32>, vector<16x256xf32>, vector<16x256xf32>, vector<16x256xf32>, vector<16x256xf32> -> vector<144x256xf32>
    %93 = arith.truncf %92 : vector<144x256xf32> to vector<144x256xbf16>
    %c0_32 = arith.constant 0 : index
    %c0_33 = arith.constant 0 : index
    %94 = vector.load %arg5[%c0_32, %c0_33] : memref<8x144xbf16, #tpu.memory_space<vmem>>, vector<8x144xbf16>
    %cst_34 = arith.constant dense<0.000000e+00> : vector<8x256xf32>
    %95 = tpu.matmul %94, %93, %cst_34 {dimension_numbers = #tpu.dot_dimension_numbers<[1], [0], [0], [1], [0, 0, 1, 1], [], []>} : vector<8x144xbf16>, vector<144x256xbf16>, vector<8x256xf32> -> vector<8x256xf32>
    %96 = vector.broadcast %6 : vector<8x1xf32> to vector<8x256xf32>
    %97 = arith.mulf %95, %96 : vector<8x256xf32>
    %98 = vector.broadcast %9 : vector<8x1xf32> to vector<8x256xf32>
    %99 = arith.addf %97, %98 : vector<8x256xf32>
    %cst_35 = arith.constant 0.000000e+00 : f32
    %100 = vector.broadcast %cst_35 : f32 to vector<8x256xf32>
    %101 = arith.maximumf %99, %100 : vector<8x256xf32>
    %102 = tpu.concatenate %101, %15, %21 in 0 : vector<8x256xf32>, vector<8x256xf32>, vector<8x256xf32> -> vector<24x256xf32>
    %103 = arith.truncf %102 : vector<24x256xf32> to vector<24x256xbf16>
    %c0_36 = arith.constant 0 : index
    %c0_37 = arith.constant 0 : index
    %104 = vector.load %arg6[%c0_36, %c0_37] : memref<16x24xbf16, #tpu.memory_space<vmem>>, vector<16x24xbf16>
    %cst_38 = arith.constant dense<0.000000e+00> : vector<16x256xf32>
    %105 = tpu.matmul %104, %103, %cst_38 {dimension_numbers = #tpu.dot_dimension_numbers<[1], [0], [0], [1], [0, 0, 1, 1], [], []>} : vector<16x24xbf16>, vector<24x256xbf16>, vector<16x256xf32> -> vector<16x256xf32>
    %c0_39 = arith.constant 0 : index
    %c0_40 = arith.constant 0 : index
    %106 = vector.load %arg7[%c0_39, %c0_40] : memref<16x1xf32, #tpu.memory_space<vmem>>, vector<16x1xf32>
    %107 = vector.broadcast %106 : vector<16x1xf32> to vector<16x256xf32>
    %108 = arith.addf %105, %107 : vector<16x256xf32>
    %109 = vector.extract_strided_slice %108 {offsets = [0, 0], sizes = [8, 256], strides = [1, 1]} : vector<16x256xf32> to vector<8x256xf32>
    %110 = vector.extract_strided_slice %108 {offsets = [8, 0], sizes = [8, 256], strides = [1, 1]} : vector<16x256xf32> to vector<8x256xf32>
    %111 = arith.truncf %110 : vector<8x256xf32> to vector<8x256xbf16>
    %112 = tpu.transpose %109, [1, 0] : vector<8x256xf32> -> vector<256x8xf32>
    %113 = vector.extract_strided_slice %112 {offsets = [0, 0], sizes = [256, 4], strides = [1, 1]} : vector<256x8xf32> to vector<256x4xf32>
    %114 = arith.truncf %113 : vector<256x4xf32> to vector<256x4xbf16>
    %115 = vector.extract_strided_slice %112 {offsets = [0, 4], sizes = [256, 4], strides = [1, 1]} : vector<256x8xf32> to vector<256x4xf32>
    %116 = arith.truncf %115 : vector<256x4xf32> to vector<256x4xbf16>
    %cst_41 = arith.constant dense<0.000000e+00> : vector<256x256xf32>
    %117 = tpu.matmul %114, %116, %cst_41 {dimension_numbers = #tpu.dot_dimension_numbers<[1], [1], [0], [0], [0, 0, 1, 0], [], []>} : vector<256x4xbf16>, vector<256x4xbf16>, vector<256x256xf32> -> vector<256x256xf32>
    %cst_42 = arith.constant dense<0xFF800000> : vector<256xf32>
    %118 = vector.multi_reduction <maximumf>, %117, %cst_42 [1] : vector<256x256xf32> to vector<256xf32>
    %119 = vector.shape_cast %118 : vector<256xf32> to vector<256x1xf32>
    %120 = vector.broadcast %119 : vector<256x1xf32> to vector<256x256xf32>
    %121 = arith.subf %117, %120 : vector<256x256xf32>
    %122 = math.exp %121 : vector<256x256xf32>
    %cst_43 = arith.constant dense<0.000000e+00> : vector<256xf32>
    %123 = vector.multi_reduction <add>, %122, %cst_43 [1] : vector<256x256xf32> to vector<256xf32>
    %124 = vector.shape_cast %123 : vector<256xf32> to vector<256x1xf32>
    %125 = tpu.reciprocal %124 {approx = true} : vector<256x1xf32> -> vector<256x1xf32>
    %126 = vector.broadcast %125 : vector<256x1xf32> to vector<256x256xf32>
    %127 = arith.mulf %122, %126 : vector<256x256xf32>
    %128 = arith.truncf %127 : vector<256x256xf32> to vector<256x256xbf16>
    %cst_44 = arith.constant dense<0.000000e+00> : vector<8x256xf32>
    %129 = tpu.matmul %111, %128, %cst_44 {dimension_numbers = #tpu.dot_dimension_numbers<[1], [1], [0], [0], [0, 0, 1, 0], [], []>} : vector<8x256xbf16>, vector<256x256xbf16>, vector<8x256xf32> -> vector<8x256xf32>
    %130 = tpu.concatenate %1, %3 in 0 : vector<8x256xf32>, vector<8x256xf32> -> vector<16x256xf32>
    %c0_45 = arith.constant 0 : index
    %c0_46 = arith.constant 0 : index
    %131 = vector.load %arg8[%c0_45, %c0_46] : memref<16x8xbf16, #tpu.memory_space<vmem>>, vector<16x8xbf16>
    %132 = arith.truncf %129 : vector<8x256xf32> to vector<8x256xbf16>
    %cst_47 = arith.constant dense<0.000000e+00> : vector<16x256xf32>
    %133 = tpu.matmul %131, %132, %cst_47 {dimension_numbers = #tpu.dot_dimension_numbers<[1], [0], [0], [1], [0, 0, 1, 1], [], []>} : vector<16x8xbf16>, vector<8x256xbf16>, vector<16x256xf32> -> vector<16x256xf32>
    %c0_48 = arith.constant 0 : index
    %c0_49 = arith.constant 0 : index
    %134 = vector.load %arg9[%c0_48, %c0_49] : memref<16x1xf32, #tpu.memory_space<vmem>>, vector<16x1xf32>
    %135 = vector.broadcast %134 : vector<16x1xf32> to vector<16x256xf32>
    %136 = arith.addf %133, %135 : vector<16x256xf32>
    %137 = arith.addf %136, %130 : vector<16x256xf32>
    %138 = vector.extract_strided_slice %137 {offsets = [0, 0], sizes = [8, 256], strides = [1, 1]} : vector<16x256xf32> to vector<8x256xf32>
    %c0_50 = arith.constant 0 : index
    %c0_51 = arith.constant 0 : index
    %c0_52 = arith.constant 0 : index
    %139 = vector.load %arg10[%c0_50, %c0_51, %c0_52] : memref<1x8x256xf32, #tpu.memory_space<vmem>>, vector<1x8x256xf32>
    %140 = vector.shape_cast %139 : vector<1x8x256xf32> to vector<8x256xf32>
    %141 = vector.shape_cast %138 : vector<8x256xf32> to vector<1x8x256xf32>
    tpu.vector_store %arg10[%c0_50, %c0_51, %c0_52], %141 {strides = array<i32>} : memref<1x8x256xf32, #tpu.memory_space<vmem>>, vector<1x8x256xf32>,
    %142 = vector.extract_strided_slice %137 {offsets = [8, 0], sizes = [8, 256], strides = [1, 1]} : vector<16x256xf32> to vector<8x256xf32>
    %c0_53 = arith.constant 0 : index
    %c0_54 = arith.constant 0 : index
    %c0_55 = arith.constant 0 : index
    %143 = vector.load %arg11[%c0_53, %c0_54, %c0_55] : memref<1x8x256xf32, #tpu.memory_space<vmem>>, vector<1x8x256xf32>
    %144 = vector.shape_cast %143 : vector<1x8x256xf32> to vector<8x256xf32>
    %145 = vector.shape_cast %142 : vector<8x256xf32> to vector<1x8x256xf32>
    tpu.vector_store %arg11[%c0_53, %c0_54, %c0_55], %145 {strides = array<i32>} : memref<1x8x256xf32, #tpu.memory_space<vmem>>, vector<1x8x256xf32>,
    return
  }
  func.func @transform_0(%arg0: i32) -> (i32, i32, i32) {
    %c0_i32 = arith.constant 0 : i32
    %c0_i32_0 = arith.constant 0 : i32
    %c0_i32_1 = arith.constant 0 : i32
    return %arg0, %c0_i32, %c0_i32_0 : i32, i32, i32
  }
  func.func @transform_1(%arg0: i32) -> (i32, i32, i32) {
    %c0_i32 = arith.constant 0 : i32
    %c0_i32_0 = arith.constant 0 : i32
    %c0_i32_1 = arith.constant 0 : i32
    return %arg0, %c0_i32, %c0_i32_0 : i32, i32, i32
  }
  func.func @transform_2(%arg0: i32) -> (i32, i32) {
    %c0_i32 = arith.constant 0 : i32
    %c0_i32_0 = arith.constant 0 : i32
    %c0_i32_1 = arith.constant 0 : i32
    return %c0_i32, %c0_i32_0 : i32, i32
  }
  func.func @transform_3(%arg0: i32) -> (i32, i32) {
    %c0_i32 = arith.constant 0 : i32
    %c0_i32_0 = arith.constant 0 : i32
    %c0_i32_1 = arith.constant 0 : i32
    return %c0_i32, %c0_i32_0 : i32, i32
  }
  func.func @transform_4(%arg0: i32) -> (i32, i32) {
    %c0_i32 = arith.constant 0 : i32
    %c0_i32_0 = arith.constant 0 : i32
    %c0_i32_1 = arith.constant 0 : i32
    return %c0_i32, %c0_i32_0 : i32, i32
  }
  func.func @transform_5(%arg0: i32) -> (i32, i32) {
    %c0_i32 = arith.constant 0 : i32
    %c0_i32_0 = arith.constant 0 : i32
    %c0_i32_1 = arith.constant 0 : i32
    return %c0_i32, %c0_i32_0 : i32, i32
  }
  func.func @transform_6(%arg0: i32) -> (i32, i32) {
    %c0_i32 = arith.constant 0 : i32
    %c0_i32_0 = arith.constant 0 : i32
    %c0_i32_1 = arith.constant 0 : i32
    return %c0_i32, %c0_i32_0 : i32, i32
  }
  func.func @transform_7(%arg0: i32) -> (i32, i32) {
    %c0_i32 = arith.constant 0 : i32
    %c0_i32_0 = arith.constant 0 : i32
    %c0_i32_1 = arith.constant 0 : i32
    return %c0_i32, %c0_i32_0 : i32, i32
  }
  func.func @transform_8(%arg0: i32) -> (i32, i32) {
    %c0_i32 = arith.constant 0 : i32
    %c0_i32_0 = arith.constant 0 : i32
    %c0_i32_1 = arith.constant 0 : i32
    return %c0_i32, %c0_i32_0 : i32, i32
  }
  func.func @transform_9(%arg0: i32) -> (i32, i32, i32) {
    %c0_i32 = arith.constant 0 : i32
    %c0_i32_0 = arith.constant 0 : i32
    %c0_i32_1 = arith.constant 0 : i32
    return %arg0, %c0_i32, %c0_i32_0 : i32, i32, i32
  }
  func.func @transform_10(%arg0: i32) -> (i32, i32, i32) {
    %c0_i32 = arith.constant 0 : i32
    %c0_i32_0 = arith.constant 0 : i32
    %c0_i32_1 = arith.constant 0 : i32
    return %arg0, %c0_i32, %c0_i32_0 : i32, i32, i32
  }
}

</mosaic_0001>

<bundles_post_ra>
// kernel: nonlocal_block_forward.1
= control target key start
LH: loop header
LB: loop body
LE: loop exit
PB: predicated region body
PF: predicated region fallthrough
CT: control target
= control target key end

     0   :  { %s2563_s13 = smov 0   ;;  %s3512_s0 = inlined_call_operand.vmem [shape: f32[2,8,256], index: 0, kind: input, shape index: {}, may-alias: {0,9}]   ;;  %s3513_s1 = inlined_call_operand.vmem [shape: f32[2,8,256], index: 1, kind: input, shape index: {}, may-alias: {1,10}]   ;;  %s3514_s2 = inlined_call_operand.vmem [shape: f32[24,1], index: 2, kind: input, shape index: {}]   ;;  %s3515_s3 = inlined_call_operand.vmem [shape: f32[24,1], index: 3, kind: input, shape index: {}]   ;;  %s3516_s4 = inlined_call_operand.vmem [shape: bf16[8,144], index: 4, kind: input, shape index: {}]   ;;  %s3517_s5 = inlined_call_operand.vmem [shape: bf16[16,24], index: 5, kind: input, shape index: {}]   ;;  %s3518_s6 = inlined_call_operand.vmem [shape: f32[16,1], index: 6, kind: input, shape index: {}]   ;;  %s3519_s7 = inlined_call_operand.vmem [shape: bf16[16,8], index: 7, kind: input, shape index: {}]   ;;  %s3520_s8 = inlined_call_operand.vmem [shape: f32[16,1], index: 8, kind: input, shape index: {}]   ;;  %s3521_s9 = inlined_call_operand.vmem [shape: f32[2,8,256], index: 9, kind: output, shape index: {0}, may-alias: {0,9}]   ;;  %s3522_s10 = inlined_call_operand.vmem [shape: f32[2,8,256], index: 10, kind: output, shape index: {1}, may-alias: {1,10}]  }
   0x1 LB: > { %s1965_s14 = sadd.s32 4294967295, %s2496_s13   ;;  %p1969_p0 = scmp.ge.s32.totalorder %s2496_s13, 1  ;;  %s2496_s13 = sphi %s2563_s13, %s21_s13  }
   0x2   : > { %p325_p1 = scmp.lt.s32.totalorder %s2496_s13, 3 }
   0x4   : > { %p326_p2 = pnand %p1969_p0, %p325_p1 }
   0x6   : > { %329 = sbr.rel (%p326_p2) target bundleno = 2248 (0x8c8), region = 56 }
   0xd   : > { %v401_v0 = vld [vmem:[%s3515_s3] sm:$0xff]  ;;  %v3523_v2 = vmov 0   ;;  %v402_v3 = vld [vmem:[%s3515_s3 + $0x8] sm:$0xff]  ;;  %p373_p3 = scmp.lt.s32.totalorder %s1965_s14, 1  ;;  %s2499_s30 = smov 17   ;;  %vm672_vm0 = vcmask 130048   ;;  %v436_v32 = vlaneseq }
   0xe   : > { %v398_v1 = vld [vmem:[%s3514_s2] sm:$0xff]  ;;  %2127 = vset.pattern.permute.xlu1 %v3523_v2  ;;  %2126 = vset.pattern.permute.xlu0 %v3523_v2  ;;  %v399_v4 = vld [vmem:[%s3514_s2 + $0x8] sm:$0xff]  ;;  %s2500_s11 = smov 16   ;;  %s2501_s12 = smov 15   ;;  %v403_v29 = vld [vmem:[%s3515_s3 + $0x10] sm:$0xff] }
   0xf   : > { %413 = vperm.xlu1 %2127, %v401_v0   ;;  %406 = vperm.xlu0 %2126, %v398_v1   ;;  %s3633_s14 = smov (!%p373_p3, %s1965_s14), 1  ;;  %s2503_s15 = smov 127   ;;  %v2618_v27 = vld [vmem:[%s3516_s4] sm:$0xff]  ;;  %v400_v30 = vld [vmem:[%s3514_s2 + $0x10] sm:$0xff]  ;;  %v2631_v33 = vand.u32 127, %v436_v32 }
  0x10   : > { %s2585_s23 = sshll.u32 %s3633_s14, 4  ;;  %s2502_s14 = smov 1   ;;  %v1979_v28 = vcombine.high %v2618_v27, %v2618_v27  ;;  %v739_v31 = vld [vmem:[%s3518_s6] sm:$0xff] }
  0x11   : > { %s2591_s26 = scalar_lea.vmem %s3512_s0, %s2585_s23  ;;  %s2599_s29 = scalar_lea.vmem %s3513_s1, %s2585_s23  ;;  %v2634_v34 = vadd.s32 128, %v2631_v33  ;;  %v443_v35 = vand.u32 15, %v2631_v33  ;;  %vm463_vm1 = vcmp.ge.s32.totalorder %v2631_v33, 16  ;;  %vm479_vm4 = vcmp.lt.s32.totalorder %v2631_v33, 17 }
  0x12   : > { %v394_v5 = vld [vmem:[%s2591_s26] sm:$0xff]  ;;  %v395_v6 = vld [vmem:[%s2591_s26 + $0x8] sm:$0xff]  ;;  %s2504_s16 = smov 113   ;;  %s2505_s17 = smov 112   ;;  %2022 = vmatprep.mubr.msk.bf16.mxu0 %vm672_vm0, %v1979_v28  ;;  %vm502_vm7 = vcmp.lt.s32.totalorder %v2631_v33, 16  ;;  %vm523_vm10 = vcmp.lt.s32.totalorder %v2631_v33, 15  ;;  %vm1986_vm11 = vmpackc.low %vm463_vm1, %vm463_vm1 }
  0x13   : > { %429 = vperm.xlu1 %2127, %v402_v3   ;;  %422 = vperm.xlu0 %2126, %v399_v4   ;;  %v396_v11 = vld [vmem:[%s2599_s29] sm:$0xff]  ;;  %v397_v12 = vld [vmem:[%s2599_s29 + $0x8] sm:$0xff]  ;;  %s2506_s20 = smov 111   ;;  %v450_v36 = vand.u32 15, %v2634_v34  ;;  %vm2639_vm2 = vcmp.ge.s32.totalorder %v443_v35, 1  ;;  %vm2668_vm9 = vcmp.le.s32.totalorder %v443_v35, 14  ;;  %s387_s25 = scalar_lea.vmem %s3521_s9, %s2585_s23 }
  0x14   : > { %vm2652_vm5 = vmand %vm463_vm1, %vm2639_vm2  ;;  %vm546_vm15 = vcmp.lt.s32.totalorder %v2631_v33, 1 }
  0x15   : > { %vm2643_vm3 = vcmp.ge.s32.totalorder %v450_v36, 1  ;;  %vm1983_vm8 = vmpackc.low %vm2652_vm5, %vm2652_vm5  ;;  %vm2676_vm12 = vcmp.le.s32.totalorder %v450_v36, 14  ;;  %vm466_vm5 = vcmp.lt.s32.totalorder %v2634_v34, 240 }
  0x16   : > { %vm1980_vm6 = vmpackc.low %vm2643_vm3, %vm2643_vm3 }
  0x17   : > { %vm2684_vm13 = vmand %vm463_vm1, %vm2668_vm9  ;;  %vm567_vm1 = vcmp.lt.s32.totalorder %v2631_v33, 127 }
  0x18   : > { %vm1989_vm14 = vmpackc.low %vm2676_vm12, %vm2676_vm12 }
  0x19   : > { %vm1992_vm0 = vmpackc.low %vm2684_vm13, %vm2684_vm13 }
  0x1a   : > { %vm2013_vm13 = vmpackc.low %vm466_vm5, %vm466_vm5 }
  0x8e   : > { %v414_v7 = vpop.permute.xlu1 %413  ;;  %v407_v8 = vpop.permute.xlu0 %406 }
  0x8f   : > { %v409_v9 = vmul.f32 %v407_v8, %v394_v5  ;;  %v410_v10 = vmul.f32 %v407_v8, %v395_v6 }
  0x91   : > { %v416_v14 = vadd.f32 %v414_v7, %v409_v9  ;;  %v417_v15 = vadd.f32 %v414_v7, %v410_v10 }
  0x92   : > { %v423_v13 = vpop.permute.xlu0 %422  ;;  %v430_v18 = vpop.permute.xlu1 %429 }
  0x93   : > { %v425_v16 = vmul.f32 %v423_v13, %v396_v11  ;;  %v426_v17 = vmul.f32 %v423_v13, %v397_v12  ;;  %v2603_v21 = vmax.f32 %v416_v14, 0.0  ;;  %v2605_v22 = vmax.f32 %v417_v15, 0.0 }
  0x95   : > { %v432_v19 = vadd.f32 %v430_v18, %v425_v16  ;;  %v433_v20 = vadd.f32 %v430_v18, %v426_v17 }
  0x97   : > { %v2607_v23 = vmax.f32 %v432_v19, 0.0  ;;  %v2609_v24 = vmax.f32 %v433_v20, 0.0 }
  0x99   : > { %v2133_v25 = vpack.i.bf16 %v2609_v24, %v2605_v22  ;;  %v2128_v26 = vpack.i.bf16 %v2607_v23, %v2603_v21 }
  0x9b   : > { %2134 = vrot.lane.b32.xlu1 %v2133_v25, %s2499_s30  ;;  %2129 = vrot.lane.b32.xlu0 %v2128_v26, %s2499_s30  ;;  %s392_s30 = scalar_lea.vmem %s3522_s10, %s2585_s23 }
  0x9f   : > { %2144 = vrot.lane.b32.xlu1 %v2133_v25, %s2500_s11  ;;  %2139 = vrot.lane.b32.xlu0 %v2128_v26, %s2500_s11 }
  0xa3   : > { %2154 = vrot.lane.b32.xlu1 %v2133_v25, %s2501_s12  ;;  %2149 = vrot.lane.b32.xlu0 %v2128_v26, %s2501_s12  ;;  %s2507_s12 = smov 124  }
  0xa7   : > { %2164 = vrot.lane.b32.xlu1 %v2133_v25, %s2502_s14  ;;  %2159 = vrot.lane.b32.xlu0 %v2128_v26, %s2502_s14 }
  0xab   : > { %2174 = vrot.lane.b32.xlu1 %v2133_v25, %s2503_s15  ;;  %2169 = vrot.lane.b32.xlu0 %v2128_v26, %s2503_s15 }
  0xaf   : > { %2184 = vrot.lane.b32.xlu1 %v2133_v25, %s2504_s16  ;;  %2179 = vrot.lane.b32.xlu0 %v2128_v26, %s2504_s16 }
  0xb3   : > { %2194 = vrot.lane.b32.xlu1 %v2133_v25, %s2505_s17  ;;  %2189 = vrot.lane.b32.xlu0 %v2128_v26, %s2505_s17 }
  0xb7   : > { %2204 = vrot.lane.b32.xlu1 %v2133_v25, %s2506_s20  ;;  %2199 = vrot.lane.b32.xlu0 %v2128_v26, %s2506_s20 }
  0xbb   : > { %726 = vperm.xlu1 %2127, %v403_v29   ;;  %719 = vperm.xlu0 %2126, %v400_v30  }
  0xbf   : > { %743 = vperm.xlu0 %2126, %v739_v31  }
 0x10d   : > { %v2135_v38 = vpop.permute.xlu1 %2134  ;;  %v2130_v39 = vpop.permute.xlu0 %2129 }
 0x10e   : > { %v2137_v41 = vunpack.i.h.bf16 %v2135_v38  ;;  %v2136_v42 = vunpack.i.l.bf16 %v2135_v38  ;;  %v2132_v43 = vunpack.i.h.bf16 %v2130_v39  ;;  %v2131_v44 = vunpack.i.l.bf16 %v2130_v39 }
 0x110   : > { %v480_v46 = vsel %vm479_vm4, %v2131_v44, %v2136_v42  ;;  %v481_v47 = vsel %vm479_vm4, %v2132_v43, %v2137_v41  ;;  %v482_v48 = vsel %vm479_vm4, %v2136_v42, %v2131_v44  ;;  %v483_v49 = vsel %vm479_vm4, %v2137_v41, %v2132_v43  ;;  %vm1998_vm4 = vmpackc.low %vm2639_vm2, %vm2639_vm2 }
 0x111   : > { %v2145_v50 = vpop.permute.xlu1 %2144  ;;  %v2140_v51 = vpop.permute.xlu0 %2139  ;;  %v1981_v52 = vpack.c.bf16 %v481_v47, %v480_v46  ;;  %v1984_v53 = vpack.c.bf16 %v483_v49, %v482_v48  ;;  %v656_v43 = vpack.c.bf16 %v2609_v24, %v2605_v22  ;;  %vm760_vm2 = vcmask 1043456  }
 0x112   : > { %v2147_v54 = vunpack.i.h.bf16 %v2145_v50  ;;  %v2146_v55 = vunpack.i.l.bf16 %v2145_v50  ;;  %v2142_v56 = vunpack.i.h.bf16 %v2140_v51  ;;  %v2141_v57 = vunpack.i.l.bf16 %v2140_v51 }
 0x113   : > { %1982 = vmatprep.subr.msk.bf16.mxu0 %vm1980_vm6, %v1981_v52  ;;  %v655_v50 = vpack.c.bf16 %v2607_v23, %v2603_v21 }
 0x114   : > { %v506_v59 = vsel %vm502_vm7, %v2147_v54, %v2142_v56  ;;  %v505_v60 = vsel %vm502_vm7, %v2146_v55, %v2141_v57  ;;  %1985 = vmatpush1.bf16.msk.msra.mxu0 %vm1983_vm8, %v1984_v53  ;;  %v503_v61 = vsel %vm502_vm7, %v2141_v57, %v2146_v55  ;;  %v504_v62 = vsel %vm502_vm7, %v2142_v56, %v2147_v54  ;;  %vm2732_vm7 = vmand %vm466_vm5, %vm2643_vm3 }
 0x115   : > { %v2155_v63 = vpop.permute.xlu1 %2154  ;;  %v2150_v0 = vpop.permute.xlu0 %2149  ;;  %v650_v1 = vpack.c.bf16 %v504_v62, %v503_v61  ;;  %v1987_v3 = vpack.c.bf16 %v506_v59, %v505_v60  ;;  %vm611_vm8 = vcmp.lt.s32.totalorder %v2631_v33, 112  ;;  %vm2004_vm3 = vmpackc.low %vm2668_vm9, %vm2668_vm9  ;;  %vm756_vm9 = vcmask 195584  }
 0x116   : > { %v2157_v5 = vunpack.i.h.bf16 %v2155_v63  ;;  %v2156_v6 = vunpack.i.l.bf16 %v2155_v63  ;;  %v2152_v7 = vunpack.i.h.bf16 %v2150_v0  ;;  %v2151_v8 = vunpack.i.l.bf16 %v2150_v0 }
 0x117   : > { %678 = vmatprep.subr.bf16.mxu0 %v650_v1 }
 0x118   : > { %v525_v10 = vsel %vm523_vm10, %v2152_v7, %v2157_v5  ;;  %v527_v11 = vsel %vm523_vm10, %v2157_v5, %v2152_v7  ;;  %v524_v12 = vsel %vm523_vm10, %v2151_v8, %v2156_v6  ;;  %v526_v13 = vsel %vm523_vm10, %v2156_v6, %v2151_v8  ;;  %1988 = vmatpush1.bf16.msk.msra.mxu0 %vm1986_vm11, %v1987_v3  ;;  %vm2007_vm10 = vmpackc.low %vm2732_vm7, %vm2732_vm7 }
 0x119   : > { %v2165_v14 = vpop.permute.xlu1 %2164  ;;  %v2160_v15 = vpop.permute.xlu0 %2159  ;;  %v1990_v16 = vpack.c.bf16 %v525_v10, %v524_v12  ;;  %v1993_v17 = vpack.c.bf16 %v527_v11, %v526_v13  ;;  %vm632_vm11 = vcmp.lt.s32.totalorder %v2631_v33, 111 }
 0x11a   : > { %v2167_v18 = vunpack.i.h.bf16 %v2165_v14  ;;  %v2166_v19 = vunpack.i.l.bf16 %v2165_v14  ;;  %v2162_v20 = vunpack.i.h.bf16 %v2160_v15  ;;  %v2161_v25 = vunpack.i.l.bf16 %v2160_v15 }
 0x11b   : > { %1991 = vmatprep.subr.msk.bf16.mxu0 %vm1989_vm14, %v1990_v16 }
 0x11c   : > { %v548_v26 = vsel %vm546_vm15, %v2162_v20, %v2167_v18  ;;  %v550_v28 = vsel %vm546_vm15, %v2167_v18, %v2162_v20  ;;  %v547_v29 = vsel %vm546_vm15, %v2161_v25, %v2166_v19  ;;  %v549_v30 = vsel %vm546_vm15, %v2166_v19, %v2161_v25  ;;  %1994 = vmatpush1.bf16.msk.msra.mxu0 %vm1992_vm0, %v1993_v17 }
 0x11d   : > { %v2175_v31 = vpop.permute.xlu1 %2174  ;;  %v2170_v32 = vpop.permute.xlu0 %2169  ;;  %v1996_v35 = vpack.c.bf16 %v548_v26, %v547_v29  ;;  %v1999_v36 = vpack.c.bf16 %v550_v28, %v549_v30  ;;  %v1978_v29 = vcombine.low %v2618_v27, %v2618_v27  ;;  %vm1804_vm0 = vcmask 64512  }
 0x11e   : > { %v2177_v38 = vunpack.i.h.bf16 %v2175_v31  ;;  %v2176_v39 = vunpack.i.l.bf16 %v2175_v31  ;;  %v2172_v41 = vunpack.i.h.bf16 %v2170_v32  ;;  %v2171_v42 = vunpack.i.l.bf16 %v2170_v32 }
 0x11f   : > { %1997 = vmatprep.subr.msk.bf16.mxu0 %vm1980_vm6, %v1996_v35  ;;  %vm588_vm6 = vcmp.lt.s32.totalorder %v2631_v33, 113 }
 0x120   : > { %v571_v44 = vsel %vm567_vm1, %v2177_v38, %v2172_v41  ;;  %v570_v45 = vsel %vm567_vm1, %v2176_v39, %v2171_v42  ;;  %2000 = vmatpush1.bf16.msk.msra.mxu0 %vm1998_vm4, %v1999_v36  ;;  %v569_v46 = vsel %vm567_vm1, %v2172_v41, %v2177_v38  ;;  %v568_v47 = vsel %vm567_vm1, %v2171_v42, %v2176_v39 }
 0x121   : > { %v2185_v48 = vpop.permute.xlu1 %2184  ;;  %v2180_v49 = vpop.permute.xlu0 %2179  ;;  %684 = vmatprep.subr.bf16.mxu0 %v656_v43  ;;  %v2002_v56 = vpack.c.bf16 %v571_v44, %v570_v45  ;;  %v2005_v40 = vpack.c.bf16 %v569_v46, %v568_v47  ;;  %v736_v44 = vpack.c.bf16 %v2609_v24, %v2609_v24  ;;  %v735_v45 = vpack.c.bf16 %v2607_v23, %v2607_v23  ;;  %v2292_v47 = vld [vmem:[%s3517_s5] sm:$0xff]  }
 0x122   : > { %v2187_v51 = vunpack.i.h.bf16 %v2185_v48  ;;  %v2186_v52 = vunpack.i.l.bf16 %v2185_v48  ;;  %v2182_v53 = vunpack.i.h.bf16 %v2180_v49  ;;  %v2181_v54 = vunpack.i.l.bf16 %v2180_v49 }
 0x123   : > { %v762_v46 = vsel %vm760_vm2, %v735_v45, 0 }
 0x124   : > { %v592_v57 = vsel %vm588_vm6, %v2187_v51, %v2182_v53  ;;  %v591_v59 = vsel %vm588_vm6, %v2186_v52, %v2181_v54  ;;  %685 = vmatpush1.bf16.msra.mxu0 %v655_v50  ;;  %v590_v60 = vsel %vm588_vm6, %v2182_v53, %v2187_v51  ;;  %v589_v61 = vsel %vm588_vm6, %v2181_v54, %v2186_v52 }
 0x125   : > { %v2195_v62 = vpop.permute.xlu1 %2194  ;;  %v2190_v63 = vpop.permute.xlu0 %2189  ;;  %2003 = vmatprep.subr.msk.bf16.mxu0 %vm1989_vm14, %v2002_v56  ;;  %v2008_v6 = vpack.c.bf16 %v592_v57, %v591_v59  ;;  %v2011_v11 = vpack.c.bf16 %v590_v60, %v589_v61  ;;  %vm638_vm14 = vmand %vm466_vm5, %vm2676_vm12  ;;  %vm940_vm12 = vcmask 31744  }
 0x126   : > { %v2197_v0 = vunpack.i.h.bf16 %v2195_v62  ;;  %v2196_v1 = vunpack.i.l.bf16 %v2195_v62  ;;  %v2192_v3 = vunpack.i.h.bf16 %v2190_v63  ;;  %v2191_v5 = vunpack.i.l.bf16 %v2190_v63  ;;  %vm2016_vm15 = vmpackc.low %vm638_vm14, %vm638_vm14 }
 0x128   : > { %v615_v7 = vsel %vm611_vm8, %v2197_v0, %v2192_v3  ;;  %v614_v8 = vsel %vm611_vm8, %v2196_v1, %v2191_v5  ;;  %2006 = vmatpush1.bf16.msk.msra.mxu0 %vm2004_vm3, %v2005_v40  ;;  %v612_v17 = vsel %vm611_vm8, %v2191_v5, %v2196_v1  ;;  %v613_v18 = vsel %vm611_vm8, %v2192_v3, %v2197_v0 }
 0x129   : > { %v2205_v9 = vpop.permute.xlu1 %2204  ;;  %v2200_v10 = vpop.permute.xlu0 %2199  ;;  %2009 = vmatprep.subr.msk.bf16.mxu0 %vm2007_vm10, %v2008_v6  ;;  %v2014_v16 = vpack.c.bf16 %v615_v7, %v614_v8  ;;  %v661_v25 = vpack.c.bf16 %v613_v18, %v612_v17 }
 0x12a   : > { %v2207_v12 = vunpack.i.h.bf16 %v2205_v9  ;;  %v2206_v13 = vunpack.i.l.bf16 %v2205_v9  ;;  %v2202_v14 = vunpack.i.h.bf16 %v2200_v10  ;;  %v2201_v15 = vunpack.i.l.bf16 %v2200_v10 }
 0x12c   : > { %v636_v19 = vsel %vm632_vm11, %v2207_v12, %v2202_v14  ;;  %v635_v20 = vsel %vm632_vm11, %v2206_v13, %v2201_v15  ;;  %2012 = vmatpush1.bf16.msk.msra.mxu0 %vm1998_vm4, %v2011_v11  ;;  %v634_v4 = vsel %vm632_vm11, %v2202_v14, %v2207_v12  ;;  %v633_v34 = vsel %vm632_vm11, %v2201_v15, %v2206_v13 }
 0x12d   : > { %2015 = vmatprep.subr.msk.bf16.mxu0 %vm2013_vm13, %v2014_v16  ;;  %v2017_v26 = vpack.c.bf16 %v636_v19, %v635_v20  ;;  %v2020_v28 = vpack.c.bf16 %v634_v4, %v633_v34 }
 0x130   : > { %691 = vmatpush1.bf16.msra.mxu0 %v661_v25 }
 0x131   : > { %2018 = vmatprep.subr.msk.bf16.mxu0 %vm2016_vm15, %v2017_v26 }
 0x134   : > { %2021 = vmatpush1.bf16.msk.msra.mxu0 %vm2004_vm3, %v2020_v28 }
 0x137   : > { %709 = vmatmul.mubr.bf16.vlgmr.msra.gmra.mrb[0].mxu0 %v1978_v29 }
 0x138   : > { %799 = vmatprep.mubr.bf16.mxu0 %v3523_v2 }
 0x13a   : > { %v720_v37 = vpop.permute.xlu0 %719  ;;  %v727_v32 = vpop.permute.xlu1 %726 }
 0x20a   : > { %v710_v30 = vpop.f32.mrb[0].mxu0 }
 0x20b   : > { %v722_v33 = vmul.f32 %v720_v37, %v710_v30  ;;  %v712_v31 = vpop.f32.mrb[1].mxu0 }
 0x20c   : > { %v723_v35 = vmul.f32 %v720_v37, %v712_v31  ;;  %v714_v36 = vpop.f32.mrb[2].mxu0 }
 0x20d   : > { %v729_v38 = vadd.f32 %v727_v32, %v722_v33  ;;  %v715_v39 = vpop.f32.mrb[3].mxu0 }
 0x20e   : > { %v730_v41 = vadd.f32 %v727_v32, %v723_v35 }
 0x20f   : > { %v731_v27 = vmax.f32 %v729_v38, 0.0 }
 0x210   : > { %v732_v42 = vmax.f32 %v730_v41, 0.0 }
 0x211   : > { %v733_v58 = vpack.c.bf16 %v2603_v21, %v731_v27  ;;  %v744_v21 = vpop.permute.xlu0 %743 }
 0x212   : > { %v734_v43 = vpack.c.bf16 %v2605_v22, %v732_v42 }
 0x214   : > { %767 = vmatprep.subr.bf16.mxu0 %v734_v43 }
 0x215   : > { %768 = vmatpush1.bf16.msra.mxu0 %v733_v58 }
 0x216   : > { %2024 = vmatprep.subr.msk.bf16.mxu0 %vm760_vm2, %v736_v44 }
 0x219   : > { %770 = vmatpush1.bf16.msra.mxu0 %v762_v46 }
 0x21c   : > { %2025 = vmatmul.mubr.msk.bf16.vlgmr.msra.gmra.mrb[4].mxu0 %vm756_vm9, %v2292_v47 }
 0x2ef   : > { %v801_v22 = vpop.f32.mrb[4].mxu0 }
 0x2f0   : > { %v802_v48 = vadd.f32 %v801_v22, %v744_v21  ;;  %v803_v24 = vpop.f32.mrb[5].mxu0 }
 0x2f1   : > { %v804_v49 = vadd.f32 %v803_v24, %v744_v21  ;;  %v2801_v50 = vpop.f32.mrb[6].mxu0 }
 0x2f2   : > { %3565 = vst [vmem:[#allocation2_spill] sm:$0xff] %v2801_v50  ;;  %v2803_v23 = vpop.f32.mrb[7].mxu0 }
 0x2f3   : > { %3566 = vst [vmem:[#allocation3_spill] sm:$0xff] %v2803_v23  ;;  %v2208_v51 = vpack.i.bf16 %v804_v49, %v802_v48 }
 0x2f5   : > { %2209 = vxpose.xlu1.b32.start.end [1/1] (short) %v2208_v51, 128 }
 0x375   : > { %v2210_v52 = vpop.trf.xlu1 }
 0x376   : > { %v2211_v54 = vunpack.i.l.bf16 %v2210_v52  ;;  %v2214_v60 = vunpack.i.h.bf16 %v2210_v52 }
 0x379   : > { %v2215_v53 = vpop.trf.xlu1 }
 0x37a   : > { %v2216_v55 = vunpack.i.l.bf16 %v2215_v53  ;;  %v2219_v56 = vunpack.i.h.bf16 %v2215_v53 }
 0x37c   : > { %v2805_v57 = vpack.c.bf16 %v2216_v55, %v2211_v54  ;;  %v2811_v61 = vpack.c.bf16 %v2219_v56, %v2214_v60 }
 0x37d   : > { %v2220_v59 = vpop.trf.xlu1 }
 0x37e   : > { %908 = vrot.lane.b32.xlu0 %v2805_v57, %s2507_s12  ;;  %2067 = vmatprep.mubr.msk.bf16.mxu1 %vm940_vm12, %v2805_v57  ;;  %v2221_v63 = vunpack.i.l.bf16 %v2220_v59  ;;  %v2224_v5 = vunpack.i.h.bf16 %v2220_v59 }
 0x381   : > { %v2225_v62 = vpop.trf.xlu1 }
 0x382   : > { %v2226_v40 = vunpack.i.l.bf16 %v2225_v62  ;;  %924 = vrot.lane.b32.xlu0 %v2811_v61, %s2507_s12  ;;  %v2229_v0 = vunpack.i.h.bf16 %v2225_v62 }
 0x384   : > { %v2815_v1 = vpack.c.bf16 %v2226_v40, %v2221_v63  ;;  %v2819_v6 = vpack.c.bf16 %v2229_v0, %v2224_v5 }
 0x385   : > { %v2230_v3 = vpop.trf.xlu1 }
 0x386   : > { %910 = vrot.lane.b32.xlu0 %v2815_v1, %s2507_s12  ;;  %v2231_v8 = vunpack.i.l.bf16 %v2230_v3  ;;  %v2234_v13 = vunpack.i.h.bf16 %v2230_v3 }
 0x389   : > { %v2235_v7 = vpop.trf.xlu1 }
 0x38a   : > { %v2236_v9 = vunpack.i.l.bf16 %v2235_v7  ;;  %926 = vrot.lane.b32.xlu0 %v2819_v6, %s2507_s12  ;;  %v2239_v10 = vunpack.i.h.bf16 %v2235_v7 }
 0x38c   : > { %v2823_v11 = vpack.c.bf16 %v2236_v9, %v2231_v8  ;;  %v2827_v14 = vpack.c.bf16 %v2239_v10, %v2234_v13 }
 0x38d   : > { %v2240_v12 = vpop.trf.xlu1 }
 0x38e   : > { %912 = vrot.lane.b32.xlu0 %v2823_v11, %s2507_s12  ;;  %v2241_v16 = vunpack.i.l.bf16 %v2240_v12  ;;  %v2244_v25 = vunpack.i.h.bf16 %v2240_v12 }
 0x391   : > { %v2245_v15 = vpop.trf.xlu1 }
 0x392   : > { %v2246_v17 = vunpack.i.l.bf16 %v2245_v15  ;;  %928 = vrot.lane.b32.xlu0 %v2827_v14, %s2507_s12  ;;  %v2249_v18 = vunpack.i.h.bf16 %v2245_v15 }
 0x394   : > { %v2831_v19 = vpack.c.bf16 %v2246_v17, %v2241_v16  ;;  %v2835_v4 = vpack.c.bf16 %v2249_v18, %v2244_v25 }
 0x395   : > { %v2250_v20 = vpop.trf.xlu1 }
 0x396   : > { %914 = vrot.lane.b32.xlu0 %v2831_v19, %s2507_s12  ;;  %v2251_v26 = vunpack.i.l.bf16 %v2250_v20  ;;  %v2254_v33 = vunpack.i.h.bf16 %v2250_v20 }
 0x399   : > { %v2255_v34 = vpop.trf.xlu1 }
 0x39a   : > { %v2256_v28 = vunpack.i.l.bf16 %v2255_v34  ;;  %930 = vrot.lane.b32.xlu0 %v2835_v4, %s2507_s12  ;;  %v2259_v29 = vunpack.i.h.bf16 %v2255_v34 }
 0x39c   : > { %v2839_v37 = vpack.c.bf16 %v2256_v28, %v2251_v26  ;;  %v2843_v31 = vpack.c.bf16 %v2259_v29, %v2254_v33 }
 0x39d   : > { %v2260_v30 = vpop.trf.xlu1 }
 0x39e   : > { %916 = vrot.lane.b32.xlu0 %v2839_v37, %s2507_s12  ;;  %v2264_v32 = vunpack.i.h.bf16 %v2260_v30  ;;  %v2261_v35 = vunpack.i.l.bf16 %v2260_v30 }
 0x3a1   : > { %v2265_v36 = vpop.trf.xlu1 }
 0x3a2   : > { %v2269_v38 = vunpack.i.h.bf16 %v2265_v36  ;;  %v2266_v39 = vunpack.i.l.bf16 %v2265_v36  ;;  %932 = vrot.lane.b32.xlu0 %v2843_v31, %s2507_s12 }
 0x3a4   : > { %v2847_v41 = vpack.c.bf16 %v2266_v39, %v2261_v35  ;;  %v2849_v27 = vpack.c.bf16 %v2269_v38, %v2264_v32 }
 0x3a5   : > { %v2270_v42 = vpop.trf.xlu1 }
 0x3a6   : > { %918 = vrot.lane.b32.xlu1 %v2847_v41, %s2507_s12  ;;  %934 = vrot.lane.b32.xlu0 %v2849_v27, %s2507_s12  ;;  %v2271_v58 = vunpack.i.l.bf16 %v2270_v42  ;;  %v2274_v21 = vunpack.i.h.bf16 %v2270_v42 }
 0x3a9   : > { %v2275_v43 = vpop.trf.xlu1 }
 0x3aa   : > { %v2276_v44 = vunpack.i.l.bf16 %v2275_v43  ;;  %v2279_v45 = vunpack.i.h.bf16 %v2275_v43 }
 0x3ac   : > { %v2855_v46 = vpack.c.bf16 %v2276_v44, %v2271_v58  ;;  %v2859_v22 = vpack.c.bf16 %v2279_v45, %v2274_v21 }
 0x3ad   : > { %v2280_v47 = vpop.trf.xlu1 }
 0x3ae   : > { %920 = vrot.lane.b32.xlu0 %v2855_v46, %s2507_s12  ;;  %v2281_v24 = vunpack.i.l.bf16 %v2280_v47  ;;  %v2284_v53 = vunpack.i.h.bf16 %v2280_v47 }
 0x3b1   : > { %v2285_v48 = vpop.trf.xlu1 }
 0x3b2   : > { %v2286_v49 = vunpack.i.l.bf16 %v2285_v48  ;;  %936 = vrot.lane.b32.xlu0 %v2859_v22, %s2507_s12  ;;  %v2289_v51 = vunpack.i.h.bf16 %v2285_v48 }
 0x3b4   : > { %v883_v52 = vpack.c.bf16 %v2286_v49, %v2281_v24  ;;  %v2864_v54 = vpack.c.bf16 %v2289_v51, %v2284_v53 }
 0x3b6   : > { %922 = vrot.lane.b32.xlu0 %v883_v52, %s2507_s12 }
 0x3ba   : > { %938 = vrot.lane.b32.xlu0 %v2864_v54, %s2507_s12 }
 0x3f0   : > { %v909_v55 = vpop.permute.xlu0 %908 }
 0x3f1   : > { %v990_v59 = vsel %vm940_vm12, %v909_v55, 0 }
 0x3f4   : > { %v925_v56 = vpop.permute.xlu0 %924 }
 0x3f5   : > { %2099 = vmatprep.subr.msk.bf16.mxu1 %vm940_vm12, %v925_v56 }
 0x3f6   : > { %2052 = vmatpush3.bf16.xpose.msra.mxu1 %v990_v59 }
 0x3f8   : > { %v911_v60 = vpop.permute.xlu0 %910 }
 0x3f9   : > { %v993_v63 = vsel %vm940_vm12, %v911_v60, 0 }
 0x3fc   : > { %v927_v62 = vpop.permute.xlu0 %926 }
 0x3fd   : > { %2100 = vmatprep.subr.msk.bf16.mxu1 %vm940_vm12, %v927_v62 }
 0x3fe   : > { %2054 = vmatpush3.bf16.xpose.msra.mxu1 %v993_v63 }
 0x400   : > { %v913_v40 = vpop.permute.xlu0 %912 }
 0x401   : > { %v996_v3 = vsel %vm940_vm12, %v913_v40, 0 }
 0x404   : > { %v929_v0 = vpop.permute.xlu0 %928 }
 0x405   : > { %2101 = vmatprep.subr.msk.bf16.mxu1 %vm940_vm12, %v929_v0 }
 0x406   : > { %2056 = vmatpush3.bf16.xpose.msra.mxu1 %v996_v3 }
 0x408   : > { %v915_v5 = vpop.permute.xlu0 %914 }
 0x409   : > { %v999_v8 = vsel %vm940_vm12, %v915_v5, 0 }
 0x40c   : > { %v931_v7 = vpop.permute.xlu0 %930 }
 0x40d   : > { %2102 = vmatprep.subr.msk.bf16.mxu1 %vm940_vm12, %v931_v7 }
 0x40e   : > { %2058 = vmatpush3.bf16.xpose.msra.mxu1 %v999_v8 }
 0x410   : > { %v917_v9 = vpop.permute.xlu0 %916 }
 0x411   : > { %v1002_v12 = vsel %vm940_vm12, %v917_v9, 0 }
 0x414   : > { %v933_v10 = vpop.permute.xlu0 %932 }
 0x415   : > { %2103 = vmatprep.subr.msk.bf16.mxu1 %vm940_vm12, %v933_v10 }
 0x416   : > { %2060 = vmatpush3.bf16.xpose.msra.mxu1 %v1002_v12 }
 0x418   : > { %v935_v13 = vpop.permute.xlu0 %934  ;;  %v919_v15 = vpop.permute.xlu1 %918 }
 0x419   : > { %2104 = vmatprep.subr.msk.bf16.mxu1 %vm940_vm12, %v935_v13  ;;  %v1005_v16 = vsel %vm940_vm12, %v919_v15, 0 }
 0x41e   : > { %2062 = vmatpush3.bf16.xpose.msra.mxu1 %v1005_v16 }
 0x420   : > { %v921_v17 = vpop.permute.xlu0 %920 }
 0x421   : > { %v1008_v20 = vsel %vm940_vm12, %v921_v17, 0 }
 0x424   : > { %v937_v18 = vpop.permute.xlu0 %936 }
 0x425   : > { %2105 = vmatprep.subr.msk.bf16.mxu1 %vm940_vm12, %v937_v18 }
 0x426   : > { %2064 = vmatpush3.bf16.xpose.msra.mxu1 %v1008_v20 }
 0x428   : > { %v923_v25 = vpop.permute.xlu0 %922 }
 0x429   : > { %v1011_v26 = vsel %vm940_vm12, %v923_v25, 0 }
 0x42c   : > { %v939_v34 = vpop.permute.xlu0 %938 }
 0x42d   : > { %2106 = vmatprep.subr.msk.bf16.mxu1 %vm940_vm12, %v939_v34 }
 0x42e   : > { %2066 = vmatpush3.bf16.xpose.msra.mxu1 %v1011_v26 }
 0x435   : > { %2068 = vmatmul.mubr.msk.bf16.vlgmr.msra.gmra.mrb[0].mxu1 %vm940_vm12, %v2805_v57 }
 0x436   : > { %2069 = vmatprep.mubr.msk.bf16.mxu1 %vm940_vm12, %v2815_v1 }
 0x43d   : > { %2070 = vmatmul.mubr.msk.bf16.gmra.mrb[4].mxu1 %vm940_vm12, %v2815_v1 }
 0x43e   : > { %2071 = vmatprep.mubr.msk.bf16.mxu1 %vm940_vm12, %v2823_v11 }
 0x445   : > { %2072 = vmatmul.mubr.msk.bf16.gmra.mrb[8].mxu1 %vm940_vm12, %v2823_v11 }
 0x446   : > { %2073 = vmatprep.mubr.msk.bf16.mxu1 %vm940_vm12, %v2831_v19 }
 0x44d   : > { %2074 = vmatmul.mubr.msk.bf16.gmra.mrb[12].mxu1 %vm940_vm12, %v2831_v19 }
 0x44e   : > { %2075 = vmatprep.mubr.msk.bf16.mxu1 %vm940_vm12, %v2839_v37 }
 0x455   : > { %2076 = vmatmul.mubr.msk.bf16.gmra.mrb[16].mxu1 %vm940_vm12, %v2839_v37 }
 0x456   : > { %2077 = vmatprep.mubr.msk.bf16.mxu1 %vm940_vm12, %v2847_v41 }
 0x45d   : > { %2078 = vmatmul.mubr.msk.bf16.gmra.mrb[20].mxu1 %vm940_vm12, %v2847_v41 }
 0x45e   : > { %2079 = vmatprep.mubr.msk.bf16.mxu1 %vm940_vm12, %v2855_v46 }
 0x465   : > { %2080 = vmatmul.mubr.msk.bf16.gmra.mrb[24].mxu1 %vm940_vm12, %v2855_v46 }
 0x466   : > { %2081 = vmatprep.mubr.msk.bf16.mxu1 %vm940_vm12, %v883_v52 }
 0x46d   : > { %2082 = vmatmul.mubr.msk.bf16.gmra.mrb[28].mxu1 %vm940_vm12, %v883_v52 }
 0x46e   : > { %2083 = vmatprep.mubr.msk.bf16.mxu1 %vm940_vm12, %v2811_v61 }
 0x475   : > { %2084 = vmatmul.mubr.msk.bf16.gmra.mrb[32].mxu1 %vm940_vm12, %v2811_v61 }
 0x476   : > { %2085 = vmatprep.mubr.msk.bf16.mxu1 %vm940_vm12, %v2819_v6 }
 0x47d   : > { %2086 = vmatmul.mubr.msk.bf16.gmra.mrb[36].mxu1 %vm940_vm12, %v2819_v6 }
 0x47e   : > { %2087 = vmatprep.mubr.msk.bf16.mxu1 %vm940_vm12, %v2827_v14 }
 0x485   : > { %2088 = vmatmul.mubr.msk.bf16.gmra.mrb[40].mxu1 %vm940_vm12, %v2827_v14 }
 0x486   : > { %2089 = vmatprep.mubr.msk.bf16.mxu1 %vm940_vm12, %v2835_v4 }
 0x48d   : > { %2090 = vmatmul.mubr.msk.bf16.gmra.mrb[44].mxu1 %vm940_vm12, %v2835_v4 }
 0x48e   : > { %2091 = vmatprep.mubr.msk.bf16.mxu1 %vm940_vm12, %v2843_v31 }
 0x495   : > { %2092 = vmatmul.mubr.msk.bf16.gmra.mrb[48].mxu1 %vm940_vm12, %v2843_v31 }
 0x496   : > { %2093 = vmatprep.mubr.msk.bf16.mxu1 %vm940_vm12, %v2849_v27 }
 0x49d   : > { %2094 = vmatmul.mubr.msk.bf16.gmra.mrb[52].mxu1 %vm940_vm12, %v2849_v27 }
 0x49e   : > { %2095 = vmatprep.mubr.msk.bf16.mxu1 %vm940_vm12, %v2859_v22 }
 0x4a5   : > { %2096 = vmatmul.mubr.msk.bf16.gmra.mrb[56].mxu1 %vm940_vm12, %v2859_v22 }
 0x4a6   : > { %2097 = vmatprep.mubr.msk.bf16.mxu1 %vm940_vm12, %v2864_v54 }
 0x4ad   : > { %2098 = vmatmul.mubr.msk.bf16.gmra.mrb[60].mxu1 %vm940_vm12, %v2864_v54 }
 0x508   : > { %v2944_v57 = vpop.f32.mrb[0].mxu1 }
 0x509   : > { %v2946_v61 = vpop.f32.mrb[1].mxu1 }
 0x50a   : > { %v2948_v1 = vpop.f32.mrb[2].mxu1  ;;  %v1230_v6 = vmax.f32 %v2944_v57, %v2946_v61 }
 0x50b   : > { %v2952_v11 = vpop.f32.mrb[3].mxu1 }
 0x50c   : > { %1231 = vmax.xlane.f32.xlu0 %v1230_v6  ;;  %v1233_v14 = vmax.f32 %v2948_v1, %v2952_v11 }
 0x510   : > { %1234 = vmax.xlane.f32.xlu0 %v1233_v14  ;;  %v2956_v19 = vpop.f32.mrb[4].mxu1 }
 0x511   : > { %v2958_v4 = vpop.f32.mrb[5].mxu1 }
 0x512   : > { %v2960_v28 = vpop.f32.mrb[6].mxu1  ;;  %v1236_v29 = vmax.f32 %v2956_v19, %v2958_v4 }
 0x513   : > { %v2964_v37 = vpop.f32.mrb[7].mxu1 }
 0x514   : > { %1237 = vmax.xlane.f32.xlu0 %v1236_v29  ;;  %v1239_v30 = vmax.f32 %v2960_v28, %v2964_v37 }
 0x518   : > { %1240 = vmax.xlane.f32.xlu0 %v1239_v30  ;;  %v2968_v33 = vpop.f32.mrb[8].mxu1 }
 0x519   : > { %v2970_v31 = vpop.f32.mrb[9].mxu1 }
 0x51a   : > { %v2972_v32 = vpop.f32.mrb[10].mxu1  ;;  %v1242_v35 = vmax.f32 %v2968_v33, %v2970_v31 }
 0x51b   : > { %v2976_v36 = vpop.f32.mrb[11].mxu1 }
 0x51c   : > { %1243 = vmax.xlane.f32.xlu0 %v1242_v35  ;;  %v1245_v38 = vmax.f32 %v2972_v32, %v2976_v36 }
 0x520   : > { %1246 = vmax.xlane.f32.xlu0 %v1245_v38  ;;  %v2980_v39 = vpop.f32.mrb[12].mxu1 }
 0x521   : > { %v2982_v41 = vpop.f32.mrb[13].mxu1 }
 0x522   : > { %v2984_v27 = vpop.f32.mrb[14].mxu1  ;;  %v1248_v42 = vmax.f32 %v2980_v39, %v2982_v41 }
 0x523   : > { %v2988_v43 = vpop.f32.mrb[15].mxu1 }
 0x524   : > { %1249 = vmax.xlane.f32.xlu0 %v1248_v42  ;;  %v1251_v58 = vmax.f32 %v2984_v27, %v2988_v43 }
 0x528   : > { %1252 = vmax.xlane.f32.xlu0 %v1251_v58  ;;  %v2992_v44 = vpop.f32.mrb[16].mxu1 }
 0x529   : > { %v2994_v45 = vpop.f32.mrb[17].mxu1 }
 0x52a   : > { %v2996_v46 = vpop.f32.mrb[18].mxu1  ;;  %v1254_v47 = vmax.f32 %v2992_v44, %v2994_v45 }
 0x52b   : > { %v3000_v21 = vpop.f32.mrb[19].mxu1 }
 0x52c   : > { %1255 = vmax.xlane.f32.xlu0 %v1254_v47  ;;  %v1257_v22 = vmax.f32 %v2996_v46, %v3000_v21 }
 0x530   : > { %1258 = vmax.xlane.f32.xlu0 %v1257_v22  ;;  %v3004_v48 = vpop.f32.mrb[20].mxu1 }
 0x531   : > { %v3006_v24 = vpop.f32.mrb[21].mxu1 }
 0x532   : > { %v3008_v49 = vpop.f32.mrb[22].mxu1  ;;  %v1260_v51 = vmax.f32 %v3004_v48, %v3006_v24 }
 0x533   : > { %v3012_v52 = vpop.f32.mrb[23].mxu1 }
 0x534   : > { %1261 = vmax.xlane.f32.xlu0 %v1260_v51  ;;  %v1263_v53 = vmax.f32 %v3008_v49, %v3012_v52 }
 0x536   : > { %1264 = vmax.xlane.f32.xlu1 %v1263_v53 }
 0x538   : > { %v3016_v54 = vpop.f32.mrb[24].mxu1 }
 0x539   : > { %v3018_v55 = vpop.f32.mrb[25].mxu1 }
 0x53a   : > { %v3020_v56 = vpop.f32.mrb[26].mxu1  ;;  %v1266_v59 = vmax.f32 %v3016_v54, %v3018_v55 }
 0x53b   : > { %v3024_v60 = vpop.f32.mrb[27].mxu1 }
 0x53c   : > { %1267 = vmax.xlane.f32.xlu0 %v1266_v59  ;;  %v1269_v62 = vmax.f32 %v3020_v56, %v3024_v60 }
 0x540   : > { %1270 = vmax.xlane.f32.xlu0 %v1269_v62  ;;  %v3028_v63 = vpop.f32.mrb[28].mxu1 }
 0x541   : > { %v3030_v40 = vpop.f32.mrb[29].mxu1 }
 0x542   : > { %v3032_v0 = vpop.f32.mrb[30].mxu1  ;;  %v1272_v3 = vmax.f32 %v3028_v63, %v3030_v40 }
 0x543   : > { %v3036_v5 = vpop.f32.mrb[31].mxu1 }
 0x544   : > { %1273 = vmax.xlane.f32.xlu0 %v1272_v3  ;;  %v1275_v7 = vmax.f32 %v3032_v0, %v3036_v5 }
 0x548   : > { %1276 = vmax.xlane.f32.xlu0 %v1275_v7  ;;  %v3040_v8 = vpop.f32.mrb[32].mxu1 }
 0x549   : > { %v3042_v9 = vpop.f32.mrb[33].mxu1 }
 0x54a   : > { %v3044_v10 = vpop.f32.mrb[34].mxu1  ;;  %v1278_v12 = vmax.f32 %v3040_v8, %v3042_v9 }
 0x54b   : > { %v3048_v13 = vpop.f32.mrb[35].mxu1 }
 0x54c   : > { %3567 = vst [vmem:[#allocation4_spill] sm:$0xff] %v3048_v13  ;;  %1279 = vmax.xlane.f32.xlu0 %v1278_v12  ;;  %v1281_v15 = vmax.f32 %v3044_v10, %v3048_v13 }
 0x550   : > { %1282 = vmax.xlane.f32.xlu0 %v1281_v15  ;;  %v3052_v16 = vpop.f32.mrb[36].mxu1 }
 0x551   : > { %3568 = vst [vmem:[#allocation5_spill] sm:$0xff] %v3052_v16  ;;  %v3054_v17 = vpop.f32.mrb[37].mxu1 }
 0x552   : > { %3569 = vst [vmem:[#allocation6_spill] sm:$0xff] %v3054_v17  ;;  %v3056_v18 = vpop.f32.mrb[38].mxu1  ;;  %v1284_v20 = vmax.f32 %v3052_v16, %v3054_v17 }
 0x553   : > { %3570 = vst [vmem:[#allocation7_spill] sm:$0xff] %v3056_v18  ;;  %v3060_v25 = vpop.f32.mrb[39].mxu1 }
 0x554   : > { %3571 = vst [vmem:[#allocation8_spill] sm:$0xff] %v3060_v25  ;;  %1285 = vmax.xlane.f32.xlu0 %v1284_v20  ;;  %v1287_v34 = vmax.f32 %v3056_v18, %v3060_v25 }
 0x558   : > { %1288 = vmax.xlane.f32.xlu0 %v1287_v34  ;;  %v3064_v26 = vpop.f32.mrb[40].mxu1 }
 0x559   : > { %3572 = vst [vmem:[#allocation9_spill] sm:$0xff] %v3064_v26  ;;  %v3066_v6 = vpop.f32.mrb[41].mxu1 }
 0x55a   : > { %3573 = vst [vmem:[#allocation10_spill] sm:$0xff] %v3066_v6  ;;  %v3068_v14 = vpop.f32.mrb[42].mxu1  ;;  %v1290_v29 = vmax.f32 %v3064_v26, %v3066_v6 }
 0x55b   : > { %3574 = vst [vmem:[#allocation11_spill] sm:$0xff] %v3068_v14  ;;  %v3072_v30 = vpop.f32.mrb[43].mxu1 }
 0x55c   : > { %3575 = vst [vmem:[#allocation12_spill] sm:$0xff] %v3072_v30  ;;  %1291 = vmax.xlane.f32.xlu0 %v1290_v29  ;;  %v1293_v35 = vmax.f32 %v3068_v14, %v3072_v30 }
 0x55e   : > { %1294 = vmax.xlane.f32.xlu1 %v1293_v35 }
 0x560   : > { %v3076_v38 = vpop.f32.mrb[44].mxu1 }
 0x561   : > { %3576 = vst [vmem:[#allocation13_spill] sm:$0xff] %v3076_v38  ;;  %v3078_v42 = vpop.f32.mrb[45].mxu1 }
 0x562   : > { %3577 = vst [vmem:[#allocation14_spill] sm:$0xff] %v3078_v42  ;;  %v3080_v58 = vpop.f32.mrb[46].mxu1  ;;  %v1296_v47 = vmax.f32 %v3076_v38, %v3078_v42 }
 0x563   : > { %3578 = vst [vmem:[#allocation15_spill] sm:$0xff] %v3080_v58  ;;  %v3084_v22 = vpop.f32.mrb[47].mxu1 }
 0x564   : > { %3579 = vst [vmem:[#allocation16_spill] sm:$0xff] %v3084_v22  ;;  %1297 = vmax.xlane.f32.xlu0 %v1296_v47  ;;  %v1299_v51 = vmax.f32 %v3080_v58, %v3084_v22 }
 0x566   : > { %1300 = vmax.xlane.f32.xlu1 %v1299_v51 }
 0x568   : > { %v3088_v53 = vpop.f32.mrb[48].mxu1 }
 0x569   : > { %v3090_v59 = vpop.f32.mrb[49].mxu1 }
 0x56a   : > { %v3094_v3 = vpop.f32.mrb[50].mxu1 }
 0x56b   : > { %v3096_v7 = vpop.f32.mrb[51].mxu1 }
 0x570   : > { %v3100_v15 = vpop.f32.mrb[52].mxu1 }
 0x571   : > { %v3102_v20 = vpop.f32.mrb[53].mxu1 }
 0x572   : > { %v3106_v29 = vpop.f32.mrb[54].mxu1 }
 0x573   : > { %v3108_v35 = vpop.f32.mrb[55].mxu1 }
 0x578   : > { %v3112_v51 = vpop.f32.mrb[56].mxu1 }
 0x579   : > { %v3114_v2 = vpop.f32.mrb[57].mxu1 }
 0x57a   : > { %v3118_v62 = vpop.f32.mrb[58].mxu1 }
 0x57b   : > { %v3120_v50 = vpop.f32.mrb[59].mxu1 }
 0x580   : > { %v3124_v23 = vpop.f32.mrb[60].mxu1 }
 0x581   : > { %v3126_v22 = vpop.f32.mrb[61].mxu1 }
 0x582   : > { %v3130_v58 = vpop.f32.mrb[62].mxu1 }
 0x583   : > { %v3132_v42 = vpop.f32.mrb[63].mxu1 }
 0x599   : > { %v1232_v38 = vpop.xlane.xlu0 %1231 }
 0x59a   : > { %v1326_v30 = vsub.f32 %v2944_v57, %v1232_v38  ;;  %v1327_v14 = vsub.f32 %v2946_v61, %v1232_v38 }
 0x59c   : > { %v1390_v34 = vmul.f32 1.442695, %v1326_v30  ;;  %v1392_v6 = vmul.f32 1.442695, %v1327_v14 }
 0x59d   : > { %v1235_v26 = vpop.xlane.xlu0 %1234 }
 0x59e   : > { %2294 = vpow2.f32 %v1390_v34  ;;  %v1328_v25 = vsub.f32 %v2948_v1, %v1235_v26  ;;  %v1329_v47 = vsub.f32 %v2952_v11, %v1235_v26 }
 0x59f   : > { %2296 = vpow2.f32 %v1392_v6 }
 0x5a0   : > { %v1394_v18 = vmul.f32 1.442695, %v1328_v25  ;;  %v1396_v17 = vmul.f32 1.442695, %v1329_v47 }
 0x5a1   : > { %v1238_v16 = vpop.xlane.xlu0 %1237 }
 0x5a2   : > { %2298 = vpow2.f32 %v1394_v18  ;;  %v1330_v12 = vsub.f32 %v2956_v19, %v1238_v16  ;;  %v1331_v13 = vsub.f32 %v2958_v4, %v1238_v16 }
 0x5a3   : > { %2300 = vpow2.f32 %v1396_v17 }
 0x5a4   : > { %v1398_v57 = vmul.f32 1.442695, %v1330_v12  ;;  %v1400_v61 = vmul.f32 1.442695, %v1331_v13 }
 0x5a5   : > { %v1241_v30 = vpop.xlane.xlu0 %1240 }
 0x5a6   : > { %2302 = vpow2.f32 %v1398_v57  ;;  %v1332_v14 = vsub.f32 %v2960_v28, %v1241_v30  ;;  %v1333_v1 = vsub.f32 %v2964_v37, %v1241_v30 }
 0x5a7   : > { %2304 = vpow2.f32 %v1400_v61  ;;  %v3580_v61 = vmax.f32 %v3088_v53, %v3090_v59 }
 0x5a8   : > { %v3144_v11 = vpop.eup %2294  ;;  %v1402_v25 = vmul.f32 1.442695, %v1332_v14  ;;  %v1404_v26 = vmul.f32 1.442695, %v1333_v1 }
 0x5a9   : > { %v3146_v6 = vpop.eup %2296  ;;  %v1244_v18 = vpop.xlane.xlu0 %1243 }
 0x5aa   : > { %2306 = vpow2.f32 %v1402_v25  ;;  %v1334_v19 = vsub.f32 %v2968_v33, %v1244_v18  ;;  %v1335_v4 = vsub.f32 %v2970_v31, %v1244_v18  ;;  %v1518_v13 = vadd.f32 %v3146_v6, %v3144_v11 }
 0x5ab   : > { %2308 = vpow2.f32 %v1404_v26 }
 0x5ac   : > { %v3152_v28 = vpop.eup %2298  ;;  %v1406_v37 = vmul.f32 1.442695, %v1334_v19  ;;  %v1408_v16 = vmul.f32 1.442695, %v1335_v4  ;;  %1519 = vadd.xlane.f32.xlu0 %v1518_v13  ;;  %v3581_v19 = vmax.f32 %v3094_v3, %v3096_v7 }
 0x5ad   : > { %v3154_v17 = vpop.eup %2300  ;;  %v1247_v38 = vpop.xlane.xlu0 %1246 }
 0x5ae   : > { %2310 = vpow2.f32 %v1406_v37  ;;  %v1336_v12 = vsub.f32 %v2972_v32, %v1247_v38  ;;  %v1337_v34 = vsub.f32 %v2976_v36, %v1247_v38  ;;  %v1521_v33 = vadd.f32 %v3154_v17, %v3152_v28 }
 0x5af   : > { %2312 = vpow2.f32 %v1408_v16 }
 0x5b0   : > { %v3160_v31 = vpop.eup %2302  ;;  %v1410_v47 = vmul.f32 1.442695, %v1336_v12  ;;  %v1412_v57 = vmul.f32 1.442695, %v1337_v34  ;;  %1522 = vadd.xlane.f32.xlu1 %v1521_v33  ;;  %1303 = vmax.xlane.f32.xlu0 %v3580_v61  ;;  %v3582_v34 = vmax.f32 %v3100_v15, %v3102_v20 }
 0x5b1   : > { %v3165_v30 = vpop.eup %2304  ;;  %v1250_v14 = vpop.xlane.xlu0 %1249 }
 0x5b2   : > { %2314 = vpow2.f32 %v1410_v47  ;;  %v1338_v32 = vsub.f32 %v2980_v39, %v1250_v14  ;;  %v1339_v36 = vsub.f32 %v2982_v41, %v1250_v14  ;;  %v1524_v1 = vadd.f32 %v3165_v30, %v3160_v31 }
 0x5b3   : > { %2316 = vpow2.f32 %v1412_v57 }
 0x5b4   : > { %v3171_v25 = vpop.eup %2306  ;;  %v1414_v26 = vmul.f32 1.442695, %v1338_v32  ;;  %v1416_v18 = vmul.f32 1.442695, %v1339_v36  ;;  %1525 = vadd.xlane.f32.xlu0 %v1524_v1  ;;  %1306 = vmax.xlane.f32.xlu1 %v3581_v19  ;;  %v3583_v36 = vmax.f32 %v3106_v29, %v3108_v35 }
 0x5b5   : > { %v3176_v4 = vpop.eup %2308  ;;  %v1253_v13 = vpop.xlane.xlu0 %1252 }
 0x5b6   : > { %2318 = vpow2.f32 %v1414_v26  ;;  %v1340_v39 = vsub.f32 %v2984_v27, %v1253_v13  ;;  %v1341_v41 = vsub.f32 %v2988_v43, %v1253_v13  ;;  %v1527_v37 = vadd.f32 %v3176_v4, %v3171_v25 }
 0x5b7   : > { %2320 = vpow2.f32 %v1416_v18 }
 0x5b8   : > { %v3182_v16 = vpop.eup %2310  ;;  %v1418_v38 = vmul.f32 1.442695, %v1340_v39  ;;  %v1420_v12 = vmul.f32 1.442695, %v1341_v41  ;;  %1528 = vadd.xlane.f32.xlu1 %v1527_v37  ;;  %1309 = vmax.xlane.f32.xlu0 %v3582_v34  ;;  %v3584_v41 = vmax.f32 %v3112_v51, %v3114_v2 }
 0x5b9   : > { %v3187_v33 = vpop.eup %2312  ;;  %v1256_v47 = vpop.xlane.xlu0 %1255 }
 0x5ba   : > { %2322 = vpow2.f32 %v1418_v38  ;;  %v1342_v27 = vsub.f32 %v2992_v44, %v1256_v47  ;;  %v1343_v43 = vsub.f32 %v2994_v45, %v1256_v47  ;;  %v1530_v57 = vadd.f32 %v3187_v33, %v3182_v16 }
 0x5bb   : > { %2324 = vpow2.f32 %v1420_v12 }
 0x5bc   : > { %v3193_v61 = vpop.eup %2314  ;;  %v1422_v14 = vmul.f32 1.442695, %v1342_v27  ;;  %v1424_v32 = vmul.f32 1.442695, %v1343_v43  ;;  %1531 = vadd.xlane.f32.xlu0 %v1530_v57  ;;  %1312 = vmax.xlane.f32.xlu1 %v3583_v36 }
 0x5bd   : > { %v3198_v1 = vpop.eup %2316  ;;  %v1259_v26 = vpop.xlane.xlu0 %1258 }
 0x5be   : > { %2326 = vpow2.f32 %v1422_v14  ;;  %v1344_v44 = vsub.f32 %v2996_v46, %v1259_v26  ;;  %v1345_v45 = vsub.f32 %v3000_v21, %v1259_v26  ;;  %v1533_v18 = vadd.f32 %v3198_v1, %v3193_v61 }
 0x5bf   : > { %2328 = vpow2.f32 %v1424_v32  ;;  %v3585_v32 = vmax.f32 %v3118_v62, %v3120_v50 }
 0x5c0   : > { %v3204_v19 = vpop.eup %2318  ;;  %v1426_v13 = vmul.f32 1.442695, %v1344_v44  ;;  %v1428_v39 = vmul.f32 1.442695, %v1345_v45  ;;  %1534 = vadd.xlane.f32.xlu1 %v1533_v18  ;;  %1315 = vmax.xlane.f32.xlu0 %v3584_v41 }
 0x5c1   : > { %v3209_v37 = vpop.eup %2320  ;;  %v1262_v38 = vpop.xlane.xlu0 %1261 }
 0x5c2   : > { %2330 = vpow2.f32 %v1426_v13  ;;  %v1346_v46 = vsub.f32 %v3004_v48, %v1262_v38  ;;  %v1347_v21 = vsub.f32 %v3006_v24, %v1262_v38  ;;  %v1536_v12 = vadd.f32 %v3209_v37, %v3204_v19 }
 0x5c3   : > { %2332 = vpow2.f32 %v1428_v39  ;;  %v1265_v34 = vpop.xlane.xlu1 %1264 }
 0x5c4   : > { %v3215_v47 = vpop.eup %2322  ;;  %v1430_v27 = vmul.f32 1.442695, %v1346_v46  ;;  %v1432_v43 = vmul.f32 1.442695, %v1347_v21  ;;  %v1348_v57 = vsub.f32 %v3008_v49, %v1265_v34  ;;  %v1349_v14 = vsub.f32 %v3012_v52, %v1265_v34  ;;  %1537 = vadd.xlane.f32.xlu0 %v1536_v12  ;;  %1318 = vmax.xlane.f32.xlu1 %v3585_v32 }
 0x5c5   : > { %v3222_v48 = vpop.eup %2324  ;;  %v3586_v49 = vmax.f32 %v3124_v23, %v3126_v22  ;;  %v3587_v21 = vmax.f32 %v3130_v58, %v3132_v42 }
 0x5c6   : > { %2334 = vpow2.f32 %v1430_v27  ;;  %v1434_v24 = vmul.f32 1.442695, %v1348_v57  ;;  %v1436_v36 = vmul.f32 1.442695, %v1349_v14  ;;  %v1539_v26 = vadd.f32 %v3222_v48, %v3215_v47 }
 0x5c7   : > { %2336 = vpow2.f32 %v1432_v43 }
 0x5c8   : > { %v3226_v44 = vpop.eup %2326  ;;  %2338 = vpow2.f32 %v1434_v24  ;;  %1540 = vadd.xlane.f32.xlu1 %v1539_v26  ;;  %1321 = vmax.xlane.f32.xlu0 %v3586_v49 }
 0x5c9   : > { %v3231_v52 = vpop.eup %2328  ;;  %2340 = vpow2.f32 %v1436_v36  ;;  %v1268_v45 = vpop.xlane.xlu0 %1267 }
 0x5ca   : > { %v1350_v18 = vsub.f32 %v3016_v54, %v1268_v45  ;;  %v1351_v13 = vsub.f32 %v3018_v55, %v1268_v45  ;;  %v1542_v39 = vadd.f32 %v3231_v52, %v3226_v44 }
 0x5cc   : > { %v3237_v41 = vpop.eup %2330  ;;  %v1438_v38 = vmul.f32 1.442695, %v1350_v18  ;;  %v1440_v46 = vmul.f32 1.442695, %v1351_v13  ;;  %1543 = vadd.xlane.f32.xlu0 %v1542_v39  ;;  %1324 = vmax.xlane.f32.xlu1 %v3587_v21 }
 0x5cd   : > { %v3242_v12 = vpop.eup %2332  ;;  %v1271_v34 = vpop.xlane.xlu0 %1270 }
 0x5ce   : > { %2342 = vpow2.f32 %v1438_v38  ;;  %v1352_v54 = vsub.f32 %v3020_v56, %v1271_v34  ;;  %v1353_v55 = vsub.f32 %v3024_v60, %v1271_v34  ;;  %v1545_v27 = vadd.f32 %v3242_v12, %v3237_v41 }
 0x5cf   : > { %2344 = vpow2.f32 %v1440_v46 }
 0x5d0   : > { %v3248_v43 = vpop.eup %2334  ;;  %v1442_v57 = vmul.f32 1.442695, %v1352_v54  ;;  %v1444_v14 = vmul.f32 1.442695, %v1353_v55  ;;  %1546 = vadd.xlane.f32.xlu1 %v1545_v27 }
 0x5d1   : > { %v3250_v32 = vpop.eup %2336  ;;  %v1274_v24 = vpop.xlane.xlu0 %1273 }
 0x5d2   : > { %v3252_v36 = vpop.eup %2338  ;;  %2346 = vpow2.f32 %v1442_v57  ;;  %v1354_v26 = vsub.f32 %v3028_v63, %v1274_v24  ;;  %v1355_v56 = vsub.f32 %v3030_v40, %v1274_v24  ;;  %v1548_v60 = vadd.f32 %v3250_v32, %v3248_v43 }
 0x5d3   : > { %v3258_v49 = vpop.eup %2340  ;;  %2348 = vpow2.f32 %v1444_v14 }
 0x5d4   : > { %v1446_v45 = vmul.f32 1.442695, %v1354_v26  ;;  %v1448_v18 = vmul.f32 1.442695, %v1355_v56  ;;  %1549 = vadd.xlane.f32.xlu0 %v1548_v60  ;;  %v1551_v13 = vadd.f32 %v3258_v49, %v3252_v36  ;;  %v3588_v60 = vld [vmem:[#allocation4_spill] sm:$0xff] }
 0x5d5   : > { %v1277_v39 = vpop.xlane.xlu0 %1276 }
 0x5d6   : > { %2350 = vpow2.f32 %v1446_v45  ;;  %v1356_v38 = vsub.f32 %v3032_v0, %v1277_v39  ;;  %v1357_v63 = vsub.f32 %v3036_v5, %v1277_v39  ;;  %1552 = vadd.xlane.f32.xlu1 %v1551_v13 }
 0x5d7   : > { %2352 = vpow2.f32 %v1448_v18 }
 0x5d8   : > { %v3264_v40 = vpop.eup %2342  ;;  %v1450_v46 = vmul.f32 1.442695, %v1356_v38  ;;  %v1452_v21 = vmul.f32 1.442695, %v1357_v63  ;;  %v3590_v63 = vld [vmem:[#allocation5_spill] sm:$0xff] }
 0x5d9   : > { %v3266_v34 = vpop.eup %2344  ;;  %v1280_v54 = vpop.xlane.xlu0 %1279 }
 0x5da   : > { %2354 = vpow2.f32 %v1450_v46  ;;  %v1358_v55 = vsub.f32 %v3040_v8, %v1280_v54  ;;  %v1359_v27 = vsub.f32 %v3042_v9, %v1280_v54  ;;  %v1554_v57 = vadd.f32 %v3266_v34, %v3264_v40 }
 0x5db   : > { %2356 = vpow2.f32 %v1452_v21  ;;  %v3591_v21 = vld [vmem:[#allocation6_spill] sm:$0xff] }
 0x5dc   : > { %v3272_v0 = vpop.eup %2346  ;;  %v1454_v5 = vmul.f32 1.442695, %v1358_v55  ;;  %v1456_v14 = vmul.f32 1.442695, %v1359_v27  ;;  %1555 = vadd.xlane.f32.xlu0 %v1554_v57 }
 0x5dd   : > { %v3274_v24 = vpop.eup %2348  ;;  %v1283_v26 = vpop.xlane.xlu0 %1282 }
 0x5de   : > { %2358 = vpow2.f32 %v1454_v5  ;;  %v1360_v56 = vsub.f32 %v3044_v10, %v1283_v26  ;;  %v1361_v45 = vsub.f32 %v3588_v60, %v1283_v26  ;;  %v1557_v8 = vadd.f32 %v3274_v24, %v3272_v0  ;;  %v3594_v26 = vld [vmem:[#allocation7_spill] sm:$0xff]  ;;  %v3595_v60 = vld [vmem:[#allocation8_spill] sm:$0xff] }
 0x5df   : > { %2360 = vpow2.f32 %v1456_v14 }
 0x5e0   : > { %v3280_v9 = vpop.eup %2350  ;;  %v1458_v18 = vmul.f32 1.442695, %v1360_v56  ;;  %v1460_v13 = vmul.f32 1.442695, %v1361_v45  ;;  %1558 = vadd.xlane.f32.xlu1 %v1557_v8 }
 0x5e1   : > { %3589 = vst [vmem:[#allocation4_spill] sm:$0xff] %v3280_v9  ;;  %v3282_v39 = vpop.eup %2352  ;;  %v1286_v38 = vpop.xlane.xlu0 %1285 }
 0x5e2   : > { %2362 = vpow2.f32 %v1458_v18  ;;  %v1362_v46 = vsub.f32 %v3590_v63, %v1286_v38  ;;  %v1363_v54 = vsub.f32 %v3591_v21, %v1286_v38  ;;  %v1560_v10 = vadd.f32 %v3282_v39, %v3280_v9  ;;  %v3597_v21 = vld [vmem:[#allocation9_spill] sm:$0xff] }
 0x5e3   : > { %2364 = vpow2.f32 %v1460_v13 }
 0x5e4   : > { %v3288_v55 = vpop.eup %2354  ;;  %v1462_v27 = vmul.f32 1.442695, %v1362_v46  ;;  %v1464_v57 = vmul.f32 1.442695, %v1363_v54  ;;  %1561 = vadd.xlane.f32.xlu0 %v1560_v10  ;;  %v3598_v10 = vld [vmem:[#allocation10_spill] sm:$0xff] }
 0x5e5   : > { %3592 = vst [vmem:[#allocation5_spill] sm:$0xff] %v3288_v55  ;;  %v3290_v5 = vpop.eup %2356  ;;  %v1289_v14 = vpop.xlane.xlu0 %1288 }
 0x5e6   : > { %3593 = vst [vmem:[#allocation6_spill] sm:$0xff] %v3290_v5  ;;  %2366 = vpow2.f32 %v1462_v27  ;;  %v1364_v56 = vsub.f32 %v3594_v26, %v1289_v14  ;;  %v1365_v45 = vsub.f32 %v3595_v60, %v1289_v14  ;;  %v1563_v8 = vadd.f32 %v3290_v5, %v3288_v55 }
 0x5e7   : > { %2368 = vpow2.f32 %v1464_v57 }
 0x5e8   : > { %v3296_v18 = vpop.eup %2358  ;;  %v1466_v13 = vmul.f32 1.442695, %v1364_v56  ;;  %v1468_v38 = vmul.f32 1.442695, %v1365_v45  ;;  %1564 = vadd.xlane.f32.xlu1 %v1563_v8  ;;  %v3600_v56 = vld [vmem:[#allocation11_spill] sm:$0xff]  ;;  %v3601_v8 = vld [vmem:[#allocation12_spill] sm:$0xff] }
 0x5e9   : > { %3596 = vst [vmem:[#allocation7_spill] sm:$0xff] %v3296_v18  ;;  %v3298_v63 = vpop.eup %2360  ;;  %v1292_v46 = vpop.xlane.xlu0 %1291 }
 0x5ea   : > { %2370 = vpow2.f32 %v1466_v13  ;;  %v1366_v54 = vsub.f32 %v3597_v21, %v1292_v46  ;;  %v1367_v27 = vsub.f32 %v3598_v10, %v1292_v46  ;;  %v1566_v14 = vadd.f32 %v3298_v63, %v3296_v18  ;;  %v3605_v18 = vld [vmem:[#allocation15_spill] sm:$0xff] }
 0x5eb   : > { %2372 = vpow2.f32 %v1468_v38  ;;  %v1295_v26 = vpop.xlane.xlu1 %1294 }
 0x5ec   : > { %v3304_v60 = vpop.eup %2362  ;;  %v1470_v57 = vmul.f32 1.442695, %v1366_v54  ;;  %v1472_v9 = vmul.f32 1.442695, %v1367_v27  ;;  %v1368_v45 = vsub.f32 %v3600_v56, %v1295_v26  ;;  %v1369_v55 = vsub.f32 %v3601_v8, %v1295_v26  ;;  %1567 = vadd.xlane.f32.xlu0 %v1566_v14  ;;  %v3603_v27 = vld [vmem:[#allocation13_spill] sm:$0xff]  ;;  %v3604_v14 = vld [vmem:[#allocation14_spill] sm:$0xff] }
 0x5ed   : > { %3599 = vst [vmem:[#allocation8_spill] sm:$0xff] %v3304_v60  ;;  %v3308_v5 = vpop.eup %2364 }
 0x5ee   : > { %3602 = vst [vmem:[#allocation9_spill] sm:$0xff] %v3308_v5  ;;  %2374 = vpow2.f32 %v1470_v57  ;;  %v1474_v13 = vmul.f32 1.442695, %v1368_v45  ;;  %v1476_v21 = vmul.f32 1.442695, %v1369_v55  ;;  %v1569_v46 = vadd.f32 %v3308_v5, %v3304_v60 }
 0x5ef   : > { %2376 = vpow2.f32 %v1472_v9 }
 0x5f0   : > { %v3312_v38 = vpop.eup %2366  ;;  %2378 = vpow2.f32 %v1474_v13  ;;  %1570 = vadd.xlane.f32.xlu1 %v1569_v46  ;;  %v3606_v13 = vld [vmem:[#allocation16_spill] sm:$0xff] }
 0x5f1   : > { %v3314_v54 = vpop.eup %2368  ;;  %2380 = vpow2.f32 %v1476_v21  ;;  %v1298_v10 = vpop.xlane.xlu0 %1297 }
 0x5f2   : > { %v1370_v26 = vsub.f32 %v3603_v27, %v1298_v10  ;;  %v1371_v56 = vsub.f32 %v3604_v14, %v1298_v10  ;;  %v1572_v57 = vadd.f32 %v3314_v54, %v3312_v38 }
 0x5f3   : > { %v1301_v55 = vpop.xlane.xlu1 %1300 }
 0x5f4   : > { %v3320_v45 = vpop.eup %2370  ;;  %v1478_v8 = vmul.f32 1.442695, %v1370_v26  ;;  %v1480_v9 = vmul.f32 1.442695, %v1371_v56  ;;  %v1372_v60 = vsub.f32 %v3605_v18, %v1301_v55  ;;  %v1373_v46 = vsub.f32 %v3606_v13, %v1301_v55  ;;  %1573 = vadd.xlane.f32.xlu0 %v1572_v57 }
 0x5f5   : > { %v3324_v5 = vpop.eup %2372 }
 0x5f6   : > { %2382 = vpow2.f32 %v1478_v8  ;;  %v1482_v21 = vmul.f32 1.442695, %v1372_v60  ;;  %v1484_v27 = vmul.f32 1.442695, %v1373_v46  ;;  %v1575_v10 = vadd.f32 %v3324_v5, %v3320_v45 }
 0x5f7   : > { %2384 = vpow2.f32 %v1480_v9 }
 0x5f8   : > { %v3328_v14 = vpop.eup %2374  ;;  %2386 = vpow2.f32 %v1482_v21  ;;  %1576 = vadd.xlane.f32.xlu1 %v1575_v10 }
 0x5f9   : > { %3607 = vst [vmem:[#allocation10_spill] sm:$0xff] %v3328_v14  ;;  %v3330_v26 = vpop.eup %2376  ;;  %2388 = vpow2.f32 %v1484_v27 }
 0x5fa   : > { %3608 = vst [vmem:[#allocation11_spill] sm:$0xff] %v3330_v26  ;;  %v3332_v18 = vpop.eup %2378  ;;  %v1578_v56 = vadd.f32 %v3330_v26, %v3328_v14 }
 0x5fb   : > { %3609 = vst [vmem:[#allocation12_spill] sm:$0xff] %v3332_v18  ;;  %v3336_v57 = vpop.eup %2380 }
 0x5fc   : > { %3610 = vst [vmem:[#allocation13_spill] sm:$0xff] %v3336_v57  ;;  %1579 = vadd.xlane.f32.xlu0 %v1578_v56  ;;  %v1581_v60 = vadd.f32 %v3336_v57, %v3332_v18 }
 0x5fe   : > { %1582 = vadd.xlane.f32.xlu1 %v1581_v60 }
 0x600   : > { %v3340_v55 = vpop.eup %2382 }
 0x601   : > { %3611 = vst [vmem:[#allocation14_spill] sm:$0xff] %v3340_v55  ;;  %v3342_v8 = vpop.eup %2384 }
 0x602   : > { %3612 = vst [vmem:[#allocation15_spill] sm:$0xff] %v3342_v8  ;;  %v3344_v9 = vpop.eup %2386  ;;  %v1584_v13 = vadd.f32 %v3342_v8, %v3340_v55 }
 0x603   : > { %3613 = vst [vmem:[#allocation16_spill] sm:$0xff] %v3344_v9  ;;  %v3348_v46 = vpop.eup %2388 }
 0x604   : > { %3614 = vst [vmem:[#allocation17_spill] sm:$0xff] %v3348_v46  ;;  %1585 = vadd.xlane.f32.xlu0 %v1584_v13  ;;  %v1587_v21 = vadd.f32 %v3348_v46, %v3344_v9 }
 0x606   : > { %1588 = vadd.xlane.f32.xlu1 %v1587_v21 }
 0x639   : > { %v1520_v27 = vpop.xlane.xlu0 %1519 }
 0x63a   : > { %2390 = vrcp.f32 %v1520_v27 }
 0x63d   : > { %v1523_v10 = vpop.xlane.xlu1 %1522  ;;  %v1304_v56 = vpop.xlane.xlu0 %1303 }
 0x63e   : > { %2392 = vrcp.f32 %v1523_v10  ;;  %v1374_v60 = vsub.f32 %v3088_v53, %v1304_v56  ;;  %v1375_v14 = vsub.f32 %v3090_v59, %v1304_v56 }
 0x640   : > { %v1486_v18 = vmul.f32 1.442695, %v1374_v60  ;;  %v1488_v57 = vmul.f32 1.442695, %v1375_v14 }
 0x641   : > { %v1526_v26 = vpop.xlane.xlu0 %1525  ;;  %v1307_v55 = vpop.xlane.xlu1 %1306 }
 0x642   : > { %2394 = vpow2.f32 %v1486_v18  ;;  %v1376_v13 = vsub.f32 %v3094_v3, %v1307_v55  ;;  %v1377_v8 = vsub.f32 %v3096_v7, %v1307_v55 }
 0x643   : > { %2396 = vpow2.f32 %v1488_v57 }
 0x644   : > { %2398 = vrcp.f32 %v1526_v26  ;;  %v1490_v21 = vmul.f32 1.442695, %v1376_v13  ;;  %v1492_v27 = vmul.f32 1.442695, %v1377_v8  ;;  %v2391_v10 = vpop.eup %2390 }
 0x645   : > { %v1529_v9 = vpop.xlane.xlu1 %1528  ;;  %v1310_v46 = vpop.xlane.xlu0 %1309  ;;  %v1647_v7 = vmul.f32 %v2391_v10, %v3146_v6  ;;  %v1646_v57 = vmul.f32 %v2391_v10, %v3144_v11 }
 0x646   : > { %2400 = vpow2.f32 %v1490_v21  ;;  %v1378_v53 = vsub.f32 %v3100_v15, %v1310_v46  ;;  %v1379_v59 = vsub.f32 %v3102_v20, %v1310_v46 }
 0x647   : > { %2402 = vpow2.f32 %v1492_v27 }
 0x648   : > { %v2393_v14 = vpop.eup %2392  ;;  %2404 = vrcp.f32 %v1529_v9  ;;  %v1494_v18 = vmul.f32 1.442695, %v1378_v53  ;;  %v1496_v56 = vmul.f32 1.442695, %v1379_v59 }
 0x649   : > { %v1532_v3 = vpop.xlane.xlu0 %1531  ;;  %v1313_v60 = vpop.xlane.xlu1 %1312  ;;  %v1649_v26 = vmul.f32 %v2393_v14, %v3154_v17  ;;  %v1648_v55 = vmul.f32 %v2393_v14, %v3152_v28 }
 0x64a   : > { %2406 = vpow2.f32 %v1494_v18  ;;  %v1380_v15 = vsub.f32 %v3106_v29, %v1313_v60  ;;  %v1381_v20 = vsub.f32 %v3108_v35, %v1313_v60 }
 0x64b   : > { %2408 = vpow2.f32 %v1496_v56  ;;  %v1711_v8 = vpack.c.bf16 %v1649_v26, %v1647_v7  ;;  %v1710_v9 = vpack.c.bf16 %v1648_v55, %v1646_v57 }
 0x64c   : > { %v3364_v46 = vpop.eup %2394  ;;  %2410 = vrcp.f32 %v1532_v3  ;;  %v1498_v13 = vmul.f32 1.442695, %v1380_v15  ;;  %v1500_v21 = vmul.f32 1.442695, %v1381_v20 }
 0x64d   : > { %v3366_v6 = vpop.eup %2396  ;;  %1742 = vmatprep.subr.bf16.mxu0 %v1711_v8  ;;  %v1535_v17 = vpop.xlane.xlu1 %1534 }
 0x64e   : > { %v1316_v11 = vpop.xlane.xlu0 %1315  ;;  %v2399_v27 = vpop.eup %2398  ;;  %2412 = vpow2.f32 %v1498_v13  ;;  %1743 = vmatpush1.bf16.xpose.msra.mxu0 %v1710_v9  ;;  %v1590_v35 = vadd.f32 %v3366_v6, %v3364_v46 }
 0x64f   : > { %v1382_v28 = vsub.f32 %v3112_v51, %v1316_v11  ;;  %v1383_v29 = vsub.f32 %v3114_v2, %v1316_v11  ;;  %2414 = vpow2.f32 %v1500_v21  ;;  %v1651_v3 = vmul.f32 %v2399_v27, %v3165_v30 }
 0x650   : > { %v3372_v10 = vpop.eup %2400  ;;  %2416 = vrcp.f32 %v1535_v17  ;;  %1591 = vadd.xlane.f32.xlu0 %v1590_v35  ;;  %v1650_v57 = vmul.f32 %v2399_v27, %v3160_v31 }
 0x651   : > { %v1502_v53 = vmul.f32 1.442695, %v1382_v28  ;;  %v1504_v59 = vmul.f32 1.442695, %v1383_v29  ;;  %v3374_v14 = vpop.eup %2402  ;;  %v1319_v56 = vpop.xlane.xlu1 %1318 }
 0x652   : > { %v1538_v18 = vpop.xlane.xlu0 %1537  ;;  %v2405_v51 = vpop.eup %2404  ;;  %v1384_v2 = vsub.f32 %v3118_v62, %v1319_v56  ;;  %v1385_v60 = vsub.f32 %v3120_v50, %v1319_v56  ;;  %v1593_v7 = vadd.f32 %v3374_v14, %v3372_v10 }
 0x653   : > { %2418 = vpow2.f32 %v1502_v53  ;;  %v1653_v26 = vmul.f32 %v2405_v51, %v3176_v4  ;;  %v1652_v55 = vmul.f32 %v2405_v51, %v3171_v25 }
 0x654   : > { %2420 = vpow2.f32 %v1504_v59  ;;  %v3384_v15 = vpop.eup %2406  ;;  %v1506_v20 = vmul.f32 1.442695, %v1384_v2  ;;  %v1508_v30 = vmul.f32 1.442695, %v1385_v60  ;;  %1594 = vadd.xlane.f32.xlu1 %v1593_v7 }
 0x655   : > { %v3386_v8 = vpop.eup %2408  ;;  %2422 = vrcp.f32 %v1538_v18  ;;  %v1713_v62 = vpack.c.bf16 %v1653_v26, %v1651_v3  ;;  %v1541_v50 = vpop.xlane.xlu1 %1540  ;;  %v1712_v13 = vpack.c.bf16 %v1652_v55, %v1650_v57 }
 0x656   : > { %v1322_v9 = vpop.xlane.xlu0 %1321  ;;  %v2411_v21 = vpop.eup %2410  ;;  %2424 = vpow2.f32 %v1506_v20  ;;  %v1596_v25 = vadd.f32 %v3386_v8, %v3384_v15 }
 0x657   : > { %v1386_v4 = vsub.f32 %v3124_v23, %v1322_v9  ;;  %v1387_v31 = vsub.f32 %v3126_v22, %v1322_v9  ;;  %2426 = vpow2.f32 %v1508_v30  ;;  %1744 = vmatprep.subr.bf16.mxu0 %v1713_v62  ;;  %v1655_v35 = vmul.f32 %v2411_v21, %v3187_v33 }
 0x658   : > { %v3392_v17 = vpop.eup %2412  ;;  %2428 = vrcp.f32 %v1541_v50  ;;  %1745 = vmatpush1.bf16.xpose.msra.mxu0 %v1712_v13  ;;  %1597 = vadd.xlane.f32.xlu0 %v1596_v25  ;;  %v1654_v3 = vmul.f32 %v2411_v21, %v3182_v16 }
 0x659   : > { %v1510_v11 = vmul.f32 1.442695, %v1386_v4  ;;  %v1512_v27 = vmul.f32 1.442695, %v1387_v31  ;;  %v3394_v28 = vpop.eup %2414  ;;  %v1325_v29 = vpop.xlane.xlu1 %1324 }
 0x65a   : > { %v2417_v23 = vpop.eup %2416  ;;  %v1544_v22 = vpop.xlane.xlu0 %1543  ;;  %v1388_v53 = vsub.f32 %v3130_v58, %v1325_v29  ;;  %v1389_v59 = vsub.f32 %v3132_v42, %v1325_v29  ;;  %v1599_v18 = vadd.f32 %v3394_v28, %v3392_v17 }
 0x65b   : > { %2430 = vpow2.f32 %v1510_v11  ;;  %v1657_v56 = vmul.f32 %v2417_v23, %v3198_v1  ;;  %v1656_v51 = vmul.f32 %v2417_v23, %v3193_v61 }
 0x65c   : > { %2432 = vpow2.f32 %v1512_v27  ;;  %v1514_v33 = vmul.f32 1.442695, %v1388_v53  ;;  %v1516_v60 = vmul.f32 1.442695, %v1389_v59  ;;  %1600 = vadd.xlane.f32.xlu1 %v1599_v18 }
 0x65d   : > { %v3404_v2 = vpop.eup %2418  ;;  %2434 = vrcp.f32 %v1544_v22  ;;  %v1715_v58 = vpack.c.bf16 %v1657_v56, %v1655_v35  ;;  %v1547_v42 = vpop.xlane.xlu1 %1546  ;;  %v1714_v26 = vpack.c.bf16 %v1656_v51, %v1654_v3 }
 0x65e   : > { %v3406_v7 = vpop.eup %2420  ;;  %2436 = vpow2.f32 %v1514_v33 }
 0x65f   : > { %v1602_v57 = vadd.f32 %v3406_v7, %v3404_v2  ;;  %v2423_v1 = vpop.eup %2422  ;;  %2438 = vpow2.f32 %v1516_v60  ;;  %1746 = vmatprep.subr.bf16.mxu0 %v1715_v58 }
 0x660   : > { %v3410_v16 = vpop.eup %2424  ;;  %2440 = vrcp.f32 %v1547_v42  ;;  %1747 = vmatpush1.bf16.xpose.msra.mxu0 %v1714_v26  ;;  %v1659_v50 = vmul.f32 %v2423_v1, %v3209_v37  ;;  %v1658_v13 = vmul.f32 %v2423_v1, %v3204_v19 }
 0x661   : > { %1603 = vadd.xlane.f32.xlu0 %v1602_v57  ;;  %v3412_v61 = vpop.eup %2426  ;;  %v1550_v55 = vpop.xlane.xlu0 %1549 }
 0x662   : > { %v2429_v20 = vpop.eup %2428  ;;  %2442 = vrcp.f32 %v1550_v55  ;;  %v1605_v30 = vadd.f32 %v3412_v61, %v3410_v16 }
 0x663   : > { %v1553_v62 = vpop.xlane.xlu1 %1552  ;;  %v1661_v9 = vmul.f32 %v2429_v20, %v3222_v48  ;;  %v1660_v21 = vmul.f32 %v2429_v20, %v3215_v47 }
 0x664   : > { %1606 = vadd.xlane.f32.xlu1 %v1605_v30  ;;  %2444 = vrcp.f32 %v1553_v62 }
 0x665   : > { %v3420_v4 = vpop.eup %2430  ;;  %v1717_v25 = vpack.c.bf16 %v1661_v9, %v1659_v50  ;;  %v1716_v11 = vpack.c.bf16 %v1660_v21, %v1658_v13  ;;  %v3615_v21 = vld [vmem:[#allocation6_spill] sm:$0xff] }
 0x666   : > { %v3422_v31 = vpop.eup %2432 }
 0x667   : > { %v1608_v27 = vadd.f32 %v3422_v31, %v3420_v4  ;;  %v2435_v29 = vpop.eup %2434  ;;  %1748 = vmatprep.subr.bf16.mxu0 %v1717_v25 }
 0x668   : > { %v3426_v37 = vpop.eup %2436  ;;  %1749 = vmatpush1.bf16.xpose.msra.mxu0 %v1716_v11  ;;  %v1663_v23 = vmul.f32 %v2435_v29, %v3231_v52  ;;  %v1662_v53 = vmul.f32 %v2435_v29, %v3226_v44  ;;  %v3616_v11 = vld [vmem:[#allocation5_spill] sm:$0xff]  ;;  %v3617_v29 = vld [vmem:[#allocation4_spill] sm:$0xff] }
 0x669   : > { %1609 = vadd.xlane.f32.xlu0 %v1608_v27  ;;  %v3428_v19 = vpop.eup %2438  ;;  %v1556_v47 = vpop.xlane.xlu0 %1555 }
 0x66a   : > { %v2441_v48 = vpop.eup %2440  ;;  %v1611_v35 = vadd.f32 %v3428_v19, %v3426_v37  ;;  %2446 = vrcp.f32 %v1556_v47 }
 0x66b   : > { %v1665_v22 = vmul.f32 %v2441_v48, %v3242_v12  ;;  %v1664_v59 = vmul.f32 %v2441_v48, %v3237_v41 }
 0x66c   : > { %v2443_v18 = vpop.eup %2442  ;;  %1612 = vadd.xlane.f32.xlu1 %v1611_v35 }
 0x66d   : > { %v1719_v56 = vpack.c.bf16 %v1665_v22, %v1663_v23  ;;  %v1559_v3 = vpop.xlane.xlu1 %1558  ;;  %v1718_v51 = vpack.c.bf16 %v1664_v59, %v1662_v53  ;;  %v1667_v60 = vmul.f32 %v2443_v18, %v3250_v32  ;;  %v1666_v41 = vmul.f32 %v2443_v18, %v3248_v43  ;;  %v740_v43 = vld [vmem:[%s3518_s6 + $0x8] sm:$0xff] }
 0x66e   : > { %v2445_v33 = vpop.eup %2444  ;;  %2448 = vrcp.f32 %v1559_v3  ;;  %v3619_v3 = vld [vmem:[#allocation8_spill] sm:$0xff] }
 0x66f   : > { %1750 = vmatprep.subr.bf16.mxu0 %v1719_v56  ;;  %v1669_v58 = vmul.f32 %v2445_v33, %v3258_v49  ;;  %v1668_v44 = vmul.f32 %v2445_v33, %v3252_v36  ;;  %v1787_v36 = vld [vmem:[%s3520_s8] sm:$0xff]  ;;  %v3618_v56 = vld [vmem:[#allocation9_spill] sm:$0xff]  ;;  %v3620_v33 = vld [vmem:[#allocation7_spill] sm:$0xff] }
 0x670   : > { %1751 = vmatpush1.bf16.xpose.msra.mxu0 %v1718_v51 }
 0x671   : > { %v1562_v52 = vpop.xlane.xlu0 %1561  ;;  %v1721_v12 = vpack.c.bf16 %v1669_v58, %v1667_v60  ;;  %v1720_v57 = vpack.c.bf16 %v1668_v44, %v1666_v41 }
 0x672   : > { %2450 = vrcp.f32 %v1562_v52 }
 0x673   : > { %1752 = vmatprep.subr.bf16.mxu0 %v1721_v12 }
 0x674   : > { %v2447_v26 = vpop.eup %2446 }
 0x675   : > { %v1565_v42 = vpop.xlane.xlu1 %1564  ;;  %v1671_v32 = vmul.f32 %v2447_v26, %v3266_v34  ;;  %v1670_v30 = vmul.f32 %v2447_v26, %v3264_v40 }
 0x676   : > { %2452 = vrcp.f32 %v1565_v42 }
 0x678   : > { %v2449_v1 = vpop.eup %2448  ;;  %1753 = vmatpush1.bf16.xpose.msra.mxu0 %v1720_v57 }
 0x679   : > { %v1568_v55 = vpop.xlane.xlu0 %1567  ;;  %v1673_v49 = vmul.f32 %v2449_v1, %v3274_v24  ;;  %v1672_v20 = vmul.f32 %v2449_v1, %v3272_v0  ;;  %v1788_v0 = vld [vmem:[%s3520_s8 + $0x8] sm:$0xff] }
 0x67a   : > { %2454 = vrcp.f32 %v1568_v55 }
 0x67b   : > { %v1723_v62 = vpack.c.bf16 %v1673_v49, %v1671_v32  ;;  %v1722_v50 = vpack.c.bf16 %v1672_v20, %v1670_v30  ;;  %v3621_v30 = vld [vmem:[#allocation11_spill] sm:$0xff] }
 0x67c   : > { %v2451_v9 = vpop.eup %2450 }
 0x67d   : > { %1791 = vperm.xlu1 %2127, %v1787_v36   ;;  %1754 = vmatprep.subr.bf16.mxu0 %v1723_v62  ;;  %v1571_v34 = vpop.xlane.xlu1 %1570  ;;  %v1675_v13 = vmul.f32 %v2451_v9, %v3282_v39  ;;  %v1674_v47 = vmul.f32 %v2451_v9, %v3617_v29  ;;  %v3622_v62 = vld [vmem:[#allocation13_spill] sm:$0xff]  ;;  %v3624_v9 = vld [vmem:[#allocation10_spill] sm:$0xff] }
 0x67e   : > { %2456 = vrcp.f32 %v1571_v34  ;;  %v3623_v34 = vld [vmem:[#allocation12_spill] sm:$0xff] }
 0x67f   : > { %748 = vperm.xlu0 %2126, %v740_v43  }
 0x680   : > { %v2453_v24 = vpop.eup %2452  ;;  %1755 = vmatpush1.bf16.xpose.msra.mxu0 %v1722_v50 }
 0x681   : > { %1796 = vperm.xlu1 %2127, %v1788_v0   ;;  %v1574_v40 = vpop.xlane.xlu0 %1573  ;;  %v1677_v25 = vmul.f32 %v2453_v24, %v3615_v21  ;;  %v1676_v27 = vmul.f32 %v2453_v24, %v3616_v11  ;;  %v3626_v21 = vld [vmem:[#allocation17_spill] sm:$0xff] }
 0x682   : > { %2458 = vrcp.f32 %v1574_v40  ;;  %v3625_v40 = vld [vmem:[#allocation15_spill] sm:$0xff] }
 0x683   : > { %v1725_v48 = vpack.c.bf16 %v1677_v25, %v1675_v13  ;;  %v1724_v35 = vpack.c.bf16 %v1676_v27, %v1674_v47  ;;  %v3627_v27 = vld [vmem:[#allocation16_spill] sm:$0xff]  ;;  %v3628_v47 = vld [vmem:[#allocation14_spill] sm:$0xff] }
 0x684   : > { %v2455_v22 = vpop.eup %2454 }
 0x685   : > { %1756 = vmatprep.subr.bf16.mxu0 %v1725_v48  ;;  %v1577_v23 = vpop.xlane.xlu1 %1576  ;;  %v1679_v18 = vmul.f32 %v2455_v22, %v3298_v63  ;;  %v1678_v60 = vmul.f32 %v2455_v22, %v3620_v33 }
 0x686   : > { %2460 = vrcp.f32 %v1577_v23 }
 0x688   : > { %v2457_v53 = vpop.eup %2456  ;;  %1757 = vmatpush1.bf16.xpose.msra.mxu0 %v1724_v35 }
 0x689   : > { %v1580_v59 = vpop.xlane.xlu0 %1579  ;;  %v1681_v39 = vmul.f32 %v2457_v53, %v3618_v56  ;;  %v1680_v51 = vmul.f32 %v2457_v53, %v3619_v3 }
 0x68a   : > { %2462 = vrcp.f32 %v1580_v59 }
 0x68b   : > { %v1583_v58 = vpop.xlane.xlu1 %1582  ;;  %v1727_v52 = vpack.c.bf16 %v1681_v39, %v1679_v18  ;;  %v1726_v12 = vpack.c.bf16 %v1680_v51, %v1678_v60 }
 0x68c   : > { %2464 = vrcp.f32 %v1583_v58  ;;  %v2459_v44 = vpop.eup %2458 }
 0x68d   : > { %1758 = vmatprep.subr.bf16.mxu0 %v1727_v52  ;;  %v1683_v26 = vmul.f32 %v2459_v44, %v3314_v54  ;;  %v1682_v1 = vmul.f32 %v2459_v44, %v3312_v38 }
 0x690   : > { %v2461_v41 = vpop.eup %2460  ;;  %1759 = vmatpush1.bf16.xpose.msra.mxu0 %v1726_v12 }
 0x691   : > { %v1586_v42 = vpop.xlane.xlu0 %1585  ;;  %v1685_v63 = vmul.f32 %v2461_v41, %v3324_v5  ;;  %v1684_v57 = vmul.f32 %v2461_v41, %v3320_v45 }
 0x692   : > { %2466 = vrcp.f32 %v1586_v42 }
 0x693   : > { %v1589_v55 = vpop.xlane.xlu1 %1588  ;;  %v1729_v32 = vpack.c.bf16 %v1685_v63, %v1683_v26  ;;  %v1728_v20 = vpack.c.bf16 %v1684_v57, %v1682_v1 }
 0x694   : > { %v2463_v49 = vpop.eup %2462  ;;  %2468 = vrcp.f32 %v1589_v55 }
 0x695   : > { %1760 = vmatprep.subr.bf16.mxu0 %v1729_v32  ;;  %v1687_v43 = vmul.f32 %v2463_v49, %v3621_v30  ;;  %v1686_v0 = vmul.f32 %v2463_v49, %v3624_v9 }
 0x696   : > { %v2465_v36 = vpop.eup %2464 }
 0x697   : > { %v1689_v50 = vmul.f32 %v2465_v36, %v3622_v62  ;;  %v1688_v5 = vmul.f32 %v2465_v36, %v3623_v34 }
 0x698   : > { %1761 = vmatpush1.bf16.xpose.msra.mxu0 %v1728_v20  ;;  %v3629_v20 = vld [vmem:[#allocation3_spill] sm:$0xff] }
 0x699   : > { %v1731_v54 = vpack.c.bf16 %v1689_v50, %v1687_v43  ;;  %v1730_v24 = vpack.c.bf16 %v1688_v5, %v1686_v0  ;;  %v3630_v5 = vld [vmem:[#allocation2_spill] sm:$0xff]  ;;  %v3631_v0 = vmov 0  }
 0x69b   : > { %1762 = vmatprep.subr.bf16.mxu0 %v1731_v54 }
 0x69c   : > { %v2467_v45 = vpop.eup %2466 }
 0x69d   : > { %v1691_v13 = vmul.f32 %v2467_v45, %v3625_v40  ;;  %v1690_v48 = vmul.f32 %v2467_v45, %v3628_v47 }
 0x69e   : > { %v2469_v38 = vpop.eup %2468 }
 0x69f   : > { %v1693_v25 = vmul.f32 %v2469_v38, %v3626_v21  ;;  %v1692_v29 = vmul.f32 %v2469_v38, %v3627_v27 }
 0x6a0   : > { %1763 = vmatpush1.bf16.xpose.msra.mxu0 %v1730_v24 }
 0x6a1   : > { %v1733_v11 = vpack.c.bf16 %v1693_v25, %v1691_v13  ;;  %v1732_v35 = vpack.c.bf16 %v1692_v29, %v1690_v48  ;;  %v2293_v13 = vld [vmem:[%s3519_s7] sm:$0xff]  }
 0x6a3   : > { %1764 = vmatprep.subr.bf16.mxu0 %v1733_v11 }
 0x6a8   : > { %1765 = vmatpush1.bf16.xpose.msra.mxu0 %v1732_v35  ;;  %v2486_v35 = vld [vmem:[%s2591_s26] sm:$0xff] }
 0x6dd   : > { %v1592_v23 = vpop.xlane.xlu0 %1591 }
 0x6de   : > { %2470 = vrcp.f32 %v1592_v23 }
 0x6e1   : > { %v1595_v22 = vpop.xlane.xlu1 %1594 }
 0x6e2   : > { %2472 = vrcp.f32 %v1595_v22 }
 0x6e5   : > { %v1598_v53 = vpop.xlane.xlu0 %1597 }
 0x6e6   : > { %2474 = vrcp.f32 %v1598_v53 }
 0x6e8   : > { %v2471_v18 = vpop.eup %2470 }
 0x6e9   : > { %v1601_v59 = vpop.xlane.xlu1 %1600  ;;  %v1695_v3 = vmul.f32 %v2471_v18, %v3366_v6  ;;  %v1694_v33 = vmul.f32 %v2471_v18, %v3364_v46 }
 0x6ea   : > { %2476 = vrcp.f32 %v1601_v59  ;;  %v2487_v59 = vld [vmem:[%s2591_s26 + $0x8] sm:$0xff] }
 0x6ec   : > { %v2473_v56 = vpop.eup %2472 }
 0x6ed   : > { %v1697_v51 = vmul.f32 %v2473_v56, %v3374_v14  ;;  %v1696_v60 = vmul.f32 %v2473_v56, %v3372_v10 }
 0x6ee   : > { %v1604_v39 = vpop.xlane.xlu0 %1603 }
 0x6ef   : > { %v1735_v58 = vpack.c.bf16 %v1697_v51, %v1695_v3  ;;  %v1734_v52 = vpack.c.bf16 %v1696_v60, %v1694_v33  ;;  %2478 = vrcp.f32 %v1604_v39  ;;  %v2488_v39 = vld [vmem:[%s2599_s29] sm:$0xff]  ;;  %v2489_v51 = vld [vmem:[%s2599_s29 + $0x8] sm:$0xff] }
 0x6f0   : > { %v2475_v44 = vpop.eup %2474 }
 0x6f1   : > { %1766 = vmatprep.subr.bf16.mxu0 %v1735_v58  ;;  %v1607_v12 = vpop.xlane.xlu1 %1606  ;;  %v1699_v26 = vmul.f32 %v2475_v44, %v3386_v8  ;;  %v1698_v14 = vmul.f32 %v2475_v44, %v3384_v15 }
 0x6f2   : > { %2480 = vrcp.f32 %v1607_v12  ;;  %1767 = vmatpush1.bf16.xpose.msra.mxu0 %v1734_v52 }
 0x6f4   : > { %v2477_v41 = vpop.eup %2476 }
 0x6f5   : > { %v1701_v6 = vmul.f32 %v2477_v41, %v3394_v28  ;;  %v1700_v46 = vmul.f32 %v2477_v41, %v3392_v17 }
 0x6f6   : > { %v1610_v42 = vpop.xlane.xlu0 %1609 }
 0x6f7   : > { %v1737_v63 = vpack.c.bf16 %v1701_v6, %v1699_v26  ;;  %v1736_v10 = vpack.c.bf16 %v1700_v46, %v1698_v14  ;;  %2482 = vrcp.f32 %v1610_v42 }
 0x6f9   : > { %1768 = vmatprep.subr.bf16.mxu0 %v1737_v63  ;;  %v1613_v57 = vpop.xlane.xlu1 %1612  ;;  %v2479_v1 = vpop.eup %2478 }
 0x6fa   : > { %2484 = vrcp.f32 %v1613_v57  ;;  %1769 = vmatpush1.bf16.xpose.msra.mxu0 %v1736_v10  ;;  %v1703_v49 = vmul.f32 %v2479_v1, %v3406_v7  ;;  %v1702_v28 = vmul.f32 %v2479_v1, %v3404_v2 }
 0x6fc   : > { %v2481_v55 = vpop.eup %2480 }
 0x6fd   : > { %v1705_v8 = vmul.f32 %v2481_v55, %v3412_v61  ;;  %v1704_v15 = vmul.f32 %v2481_v55, %v3410_v16  ;;  %v1792_v21 = vpop.permute.xlu1 %1791 }
 0x6fe   : > { %v749_v32 = vpop.permute.xlu0 %748 }
 0x6ff   : > { %v808_v17 = vadd.f32 %v3629_v20, %v749_v32  ;;  %v1739_v36 = vpack.c.bf16 %v1705_v8, %v1703_v49  ;;  %v1738_v30 = vpack.c.bf16 %v1704_v15, %v1702_v28  ;;  %v806_v45 = vadd.f32 %v3630_v5, %v749_v32 }
 0x701   : > { %v811_v43 = vpack.c.bf16 %v808_v17, %v808_v17  ;;  %1770 = vmatprep.subr.bf16.mxu0 %v1739_v36  ;;  %v2483_v62 = vpop.eup %2482  ;;  %v810_v9 = vpack.c.bf16 %v806_v45, %v806_v45  ;;  %v1797_v29 = vpop.permute.xlu1 %1796 }
 0x702   : > { %1771 = vmatpush1.bf16.xpose.msra.mxu0 %v1738_v30  ;;  %v1707_v54 = vmul.f32 %v2483_v62, %v3422_v31  ;;  %v1706_v61 = vmul.f32 %v2483_v62, %v3420_v4 }
 0x703   : > { %1774 = vmatprep.mubr.bf16.mxu0 %v811_v43 }
 0x704   : > { %v2485_v50 = vpop.eup %2484 }
 0x705   : > { %v1709_v7 = vmul.f32 %v2485_v50, %v3428_v19  ;;  %v1708_v2 = vmul.f32 %v2485_v50, %v3426_v37 }
 0x707   : > { %v1741_v34 = vpack.c.bf16 %v1709_v7, %v1707_v54  ;;  %v1740_v16 = vpack.c.bf16 %v1708_v2, %v1706_v61 }
 0x709   : > { %1772 = vmatprep.subr.bf16.mxu0 %v1741_v34 }
 0x70a   : > { %1773 = vmatpush1.bf16.xpose.msra.mxu0 %v1740_v16 }
 0x711   : > { %1775 = vmatmul.mubr.bf16.vlgmr.msra.gmra.mrb[8].mxu0 %v810_v9 }
 0x712   : > { %1846 = vmatprep.mubr.bf16.mxu0 %v3631_v0 }
 0x7e4   : > { %v1776_v38 = vpop.f32.mrb[8].mxu0 }
 0x7e5   : > { %v1785_v24 = vpack.c.bf16 %v1776_v38, %v1776_v38  ;;  %v1778_v31 = vpop.f32.mrb[9].mxu0 }
 0x7e6   : > { %v1786_v40 = vpack.c.bf16 %v1778_v31, %v1778_v31  ;;  %v1780_v19 = vpop.f32.mrb[10].mxu0 }
 0x7e7   : > { %v1809_v4 = vsel %vm760_vm2, %v1785_v24, 0  ;;  %v1781_v37 = vpop.f32.mrb[11].mxu0 }
 0x7e8   : > { %2043 = vmatprep.subr.msk.bf16.mxu0 %vm760_vm2, %v1786_v40 }
 0x7e9   : > { %1815 = vmatpush1.bf16.msra.mxu0 %v1809_v4 }
 0x7ec   : > { %2044 = vmatmul.mubr.msk.bf16.vlgmr.msra.gmra.mrb[12].mxu0 %vm1804_vm0, %v2293_v13 }
 0x8bf   : > { %v1848_v25 = vpop.f32.mrb[12].mxu0 }
 0x8c0   : > { %v1849_v11 = vadd.f32 %v1848_v25, %v1792_v21  ;;  %v1850_v27 = vpop.f32.mrb[13].mxu0 }
 0x8c1   : > { %v1851_v47 = vadd.f32 %v1850_v27, %v1792_v21  ;;  %v1852_v48 = vpop.f32.mrb[14].mxu0 }
 0x8c2   : > { %v1857_v23 = vadd.f32 %v2486_v35, %v1849_v11  ;;  %v1853_v22 = vadd.f32 %v1852_v48, %v1797_v29  ;;  %v1854_v53 = vpop.f32.mrb[15].mxu0 }
 0x8c3   : > { %v1858_v18 = vadd.f32 %v2487_v59, %v1851_v47  ;;  %v1855_v56 = vadd.f32 %v1854_v53, %v1797_v29 }
 0x8c4   : > { %1861 = vst [vmem:[%s387_s25] sm:$0xff] %v1857_v23  ;;  %v1859_v3 = vadd.f32 %v2488_v39, %v1853_v22 }
 0x8c5   : > { %1862 = vst [vmem:[%s387_s25 + $0x8] sm:$0xff] %v1858_v18  ;;  %v1860_v33 = vadd.f32 %v2489_v51, %v1855_v56 }
 0x8c6   : > { %1863 = vst [vmem:[%s392_s30] sm:$0xff] %v1859_v3 }
 0x8c7   : > { %1864 = vst [vmem:[%s392_s30 + $0x8] sm:$0xff] %v1860_v33 }
 0x8c8 PF: > { %s21_s13 = sadd.s32 1, %s2496_s13  }
 0x8c9   : > { %p18_p4 = scmp.ge.s32.totalorder %s21_s13, 4  }
 0x8cb   :  { %20 = sbr.rel (!%p18_p4) target bundleno = 1 (0x1), region = 101 }

</bundles_post_ra>
